<compile_context>
chip_gen: v7x
topology: tpu7x:2x2x1
jax: 0.10.0
libtpu: 0.0.40
codegen_flags: <defaults>
</compile_context>

<pallas_src>
import functools

import jax
import jax.numpy as jnp
from jax import lax
from jax.experimental import pallas as pl
from jax.experimental.pallas import tpu as pltpu

EPS = 1e-5
LANES = 128
COL0 = 8      # sublane-aligned column where the interior starts in the y1 scratch


def _round_up(x, m):
    return (x + m - 1) // m * m


# ----------------------------- fused block kernel --------------------------- #

def _make_block_kernel(H, W, Hp, Wp, CM, subsample):
    """One grid step == one image.  CM = Cmid rounded to 8 (NOT 128)."""
    HW = H * W

    def body(x_ref, w1_ref, b1_ref, w2_ref, b2_ref, w3s_ref, b3s_ref,
             sel_ref, o_ref, y1p_ref):
        x = x_ref[0]                                        # (H*W, Cin) bf16

        # ---- stage 1: 1x1 conv (BN folded) + ReLU, interior rows only -------
        y1 = jnp.dot(x, w1_ref[...], preferred_element_type=jnp.float32)
        y1 = jnp.maximum(y1 + b1_ref[...], 0.0)             # (HW, CM) f32

        # Scatter into a spatially zero-padded VMEM scratch so the 3x3 conv sees
        # true zero padding.  The ring is re-zeroed every step (cheap, and safe
        # under megacore grid splitting); the interior write starts at a
        # sublane-aligned column (COL0 = 8) so the store needs no relayout.
        y1p_ref[...] = jnp.zeros_like(y1p_ref)
        y1p_ref[1:H + 1, COL0:COL0 + W, :] = y1.reshape(H, W, CM)

        # ---- stage 2: 3x3 conv as 9 accumulating MXU dots (K = CM each) -----
        # No (HW, 9*CM) patches buffer / lane-concat; taps are shifted views of
        # the padded scratch.  f32 accumulation across taps.
        y1p = y1p_ref[...].astype(jnp.bfloat16)             # (Hp, Wp, CM)
        y2 = jnp.zeros((HW, CM), jnp.float32)
        t = 0
        for dy in range(3):
            for dx in range(3):
                c0 = COL0 - 1 + dx
                tap = y1p[dy:dy + H, c0:c0 + W, :].reshape(HW, CM)
                y2 = y2 + jnp.dot(tap, w2_ref[t],
                                  preferred_element_type=jnp.float32)
                t += 1
        y2 = jnp.maximum(y2 + b2_ref[...], 0.0)             # (HW, CM) f32

        # ---- fused stage 3 + shortcut: one dot on z = [y2 | x] --------------
        z = jnp.concatenate([y2.astype(jnp.bfloat16), x], axis=-1)  # (HW, CM+Cin)
        if subsample:
            # stride-2: pick rows (2i, 2j) with an exact 0/1 selection matmul
            # (bf16 values are reproduced exactly; avoids strided-slice relayout).
            z = jnp.dot(sel_ref[...], z,
                        preferred_element_type=jnp.float32).astype(jnp.bfloat16)
        y3 = jnp.dot(z, w3s_ref[...], preferred_element_type=jnp.float32)
        o_ref[0] = jnp.maximum(y3 + b3s_ref[...], 0.0).astype(o_ref.dtype)

    if subsample:
        def kernel(x_ref, w1_ref, b1_ref, w2_ref, b2_ref, w3s_ref, b3s_ref,
                   sel_ref, o_ref, y1p_ref):
            body(x_ref, w1_ref, b1_ref, w2_ref, b2_ref, w3s_ref, b3s_ref,
                 sel_ref, o_ref, y1p_ref)
    else:
        def kernel(x_ref, w1_ref, b1_ref, w2_ref, b2_ref, w3s_ref, b3s_ref,
                   o_ref, y1p_ref):
            body(x_ref, w1_ref, b1_ref, w2_ref, b2_ref, w3s_ref, b3s_ref,
                 None, o_ref, y1p_ref)
    return kernel


# --------------------------- parameter preparation -------------------------- #

def _fold_bn(bn):
    scale = bn["gamma"] / jnp.sqrt(bn["var"] + EPS)
    bias = bn["beta"] - bn["mean"] * scale
    return scale, bias


def _prep_params(params, Cin, Cmid, Cout, CM, COP, residual):
    """Fold BN into conv weights; pad only where layout needs it."""
    s1, b1 = _fold_bn(params["bn1"])
    s2, b2 = _fold_bn(params["bn2"])
    s3, b3 = _fold_bn(params["bn3"])

    w1 = params["w1"] * s1[None, :]                          # (Cin, Cmid)
    w1p = jnp.zeros((Cin, CM), jnp.float32).at[:, :Cmid].set(w1)
    b1p = jnp.zeros((1, CM), jnp.float32).at[0, :Cmid].set(b1)

    w2 = params["w2"] * s2[None, None, None, :]              # (3,3,Cmid,Cmid) HWIO
    w2p = jnp.zeros((3, 3, CM, CM), jnp.float32).at[:, :, :Cmid, :Cmid].set(w2)
    w2p = w2p.reshape(9, CM, CM)                             # tap-major for w2_ref[t]
    b2p = jnp.zeros((1, CM), jnp.float32).at[0, :Cmid].set(b2)

    # Fused stage-3 + shortcut weight: K = CM + Cin, lane-dense COP output.
    w3 = params["w3"] * s3[None, :]                          # (Cmid, Cout)
    if residual:
        wsc = jnp.eye(Cin, Cout, dtype=jnp.float32)          # identity residual
        bsc = jnp.zeros((Cout,), jnp.float32)
    else:
        ss, bs = _fold_bn(params["bns"])
        wsc = params["ws"] * ss[None, :]                     # (Cin, Cout)
        bsc = bs
    w3s = jnp.zeros((CM + Cin, COP), jnp.float32)
    w3s = w3s.at[:Cmid, :Cout].set(w3).at[CM:, :Cout].set(wsc)
    b3s = jnp.zeros((1, COP), jnp.float32).at[0, :Cout].set(b3 + bsc)

    return (w1p.astype(jnp.bfloat16), b1p,
            w2p.astype(jnp.bfloat16), b2p,
            w3s.astype(jnp.bfloat16), b3s)


# ------------------------------ block forward ------------------------------- #

@functools.partial(jax.jit, static_argnums=(2,))
def block_forward(x_nchw, params, stride):
    """Forward of Block (FLAGS.zpm_pruning == False path). Input NCHW, output NCHW."""
    x = jnp.transpose(x_nchw, (0, 2, 3, 1)).astype(jnp.float32)   # NCHW -> NHWC
    N, H, W, Cin = x.shape
    Cmid = params["w1"].shape[-1]
    Cout = params["w3"].shape[-1]
    residual = (stride == 1 and Cin == Cout)
    subsample = stride == 2

    assert W % 8 == 0, "fused kernel assumes W % 8 == 0"
    assert H % stride == 0 and W % stride == 0

    CM = _round_up(Cmid, 8)          # contraction dims stay near real width
    COP = _round_up(Cout, LANES)     # only the stored output is lane-dense
    Hp = H + 2
    Wp = COL0 + _round_up(W + 1, 8)
    Ho, Wo = H // stride, W // stride

    # Unpadded bf16 activation slab; no HBM pre-pad / channel pad pass.
    x_flat = x.reshape(N, H * W, Cin).astype(jnp.bfloat16)
    w1p, b1p, w2p, b2p, w3s, b3s = _prep_params(
        params, Cin, Cmid, Cout, CM, COP, residual)

    args = [x_flat, w1p, b1p, w2p, b2p, w3s, b3s]
    in_specs = [
        pl.BlockSpec((1, H * W, Cin), lambda n: (n, 0, 0)),    # per-image tile
        pl.BlockSpec((Cin, CM), lambda n: (0, 0)),             # constant-index
        pl.BlockSpec((1, CM), lambda n: (0, 0)),               # operands: not
        pl.BlockSpec((9, CM, CM), lambda n: (0, 0, 0)),        # re-fetched across
        pl.BlockSpec((1, CM), lambda n: (0, 0)),               # grid steps
        pl.BlockSpec((CM + Cin, COP), lambda n: (0, 0)),
        pl.BlockSpec((1, COP), lambda n: (0, 0)),
    ]
    if subsample:
        # Exact 0/1 row-selection matrix picking output rows (s*i, s*j).
        r = jnp.arange(Ho * Wo)
        src = (stride * (r // Wo)) * W + stride * (r % Wo)
        sel = (jnp.arange(H * W)[None, :] == src[:, None]).astype(jnp.bfloat16)
        args.append(sel)
        in_specs.append(pl.BlockSpec((Ho * Wo, H * W), lambda n: (0, 0)))

    kernel = _make_block_kernel(H, W, Hp, Wp, CM, subsample)
    out = pl.pallas_call(
        kernel,
        out_shape=jax.ShapeDtypeStruct((N, Ho * Wo, COP), jnp.bfloat16),
        grid=(N,),
        in_specs=in_specs,
        out_specs=pl.BlockSpec((1, Ho * Wo, COP), lambda n: (n, 0, 0)),
        scratch_shapes=[pltpu.VMEM((Hp, Wp, CM), jnp.float32)],
        compiler_params=pltpu.CompilerParams(
            dimension_semantics=("parallel",),
            vmem_limit_bytes=32 * 1024 * 1024),
    )(*args)

    # In a full network you would keep the padded NHWC bf16 layout between
    # blocks; the slice/transpose/cast below only restores the NCHW f32 API.
    out = out.reshape(N, Ho, Wo, COP)[:, :, :, :Cout].astype(jnp.float32)
    return jnp.transpose(out, (0, 3, 1, 2))                      # NHWC -> NCHW


# ------------------------ deterministic parameters --------------------------- #

def _conv_w(key, shape):
    fan_in = 1
    for d in shape[:-1]:
        fan_in *= d
    return jax.random.normal(key, shape, jnp.float32) / jnp.sqrt(float(fan_in))


def _bn_p(key, c):
    k1, k2, k3, k4 = jax.random.split(key, 4)
    return dict(
        gamma=jax.random.uniform(k1, (c,), jnp.float32, 0.5, 1.5),
        beta=0.1 * jax.random.normal(k2, (c,), jnp.float32),
        mean=0.1 * jax.random.normal(k3, (c,), jnp.float32),
        var=jax.random.uniform(k4, (c,), jnp.float32, 0.5, 1.5),
    )


def init_block_params(key, inp, outp, stride):
    midp = outp // 4                                   # midp = [i // 4 for i in outp]
    keys = jax.random.split(key, 8)
    params = dict(
        w1=_conv_w(keys[0], (inp, midp)), bn1=_bn_p(keys[1], midp),
        w2=_conv_w(keys[2], (3, 3, midp, midp)), bn2=_bn_p(keys[3], midp),
        w3=_conv_w(keys[4], (midp, outp)), bn3=_bn_p(keys[5], outp),
    )
    if not (stride == 1 and inp == outp):
        params["ws"] = _conv_w(keys[6], (inp, outp))
        params["bns"] = _bn_p(keys[7], outp)
    return params


# -------------------------------- reference ---------------------------------- #

def ref_block(x_nchw, params, stride):
    x = jnp.transpose(x_nchw, (0, 2, 3, 1))
    inp = x.shape[-1]
    outp = params["w3"].shape[-1]
    residual_connection = (stride == 1 and inp == outp)

    def bn(y, p):
        s = p["gamma"] / jnp.sqrt(p["var"] + EPS)
        return y * s + (p["beta"] - p["mean"] * s)

    def conv(z, w, s, pad):
        return lax.conv_general_dilated(z, w, (s, s), [(pad, pad), (pad, pad)],
                                        dimension_numbers=("NHWC", "HWIO", "NHWC"))

    y = jax.nn.relu(bn(conv(x, params["w1"][None, None], 1, 0), params["bn1"]))
    y = jax.nn.relu(bn(conv(y, params["w2"], stride, 1), params["bn2"]))
    y = bn(conv(y, params["w3"][None, None], 1, 0), params["bn3"])
    if residual_connection:
        y = y + x
    else:
        y = y + bn(conv(x, params["ws"][None, None], stride, 0), params["bns"])
    y = jax.nn.relu(y)
    return jnp.transpose(y, (0, 3, 1, 2))


def _check(out, ref, name):
    # bf16 MXU operands, bf16 residual path and bf16 output vs an f32 XLA
    # reference: structural bugs give O(1) relative error; bf16 rounding stays
    # well under 4% of the output scale.
    rel = float(jnp.max(jnp.abs(out - ref)) / (jnp.max(jnp.abs(ref)) + 1e-6))
    assert rel < 0.04, f"{name}: relative max error {rel:.4f}"


# ----------------------------------- main ------------------------------------ #

if __name__ == "__main__":
    key = jax.random.PRNGKey(0)
    k_res, k_sc, kx1, kx2 = jax.random.split(key, 4)

    # Config 1: identity residual (stride=1, inp == outp)
    inp1, outp1, stride1 = 32, 32, 1
    params1 = init_block_params(k_res, inp1, outp1, stride1)
    x1 = jax.random.normal(kx1, (2, inp1, 16, 16), jnp.float32)   # NCHW like PyTorch
    out1 = block_forward(x1, params1, stride1)
    jax.block_until_ready(out1)
    assert out1.shape == (2, outp1, 16, 16)
    _check(out1, ref_block(x1, params1, stride1), "residual config")

    # Config 2: projection shortcut (stride=2, inp != outp)
    inp2, outp2, stride2 = 16, 32, 2
    params2 = init_block_params(k_sc, inp2, outp2, stride2)
    x2 = jax.random.normal(kx2, (2, inp2, 16, 16), jnp.float32)   # NCHW like PyTorch
    out2 = block_forward(x2, params2, stride2)
    jax.block_until_ready(out2)
    assert out2.shape == (2, outp2, 8, 8)
    _check(out2, ref_block(x2, params2, stride2), "shortcut config")

    # TODO(synk): the FLAGS.zpm_pruning / reinit_params channel-permutation and
    # masking branches are slimmable-pruning training bookkeeping and are not
    # implemented; only the standard bottleneck forward is reproduced.
    print("KERNEL_OK")
</pallas_src>

<mosaic_0001>
module attributes {stable_mosaic.version = 11 : i64} {
  func.func @kernel(%arg0: i32, %arg1: memref<1x256x32xbf16, #tpu.memory_space<vmem>>, %arg2: memref<32x8xbf16, #tpu.memory_space<vmem>>, %arg3: memref<1x8xf32, #tpu.memory_space<vmem>>, %arg4: memref<9x8x8xbf16, #tpu.memory_space<vmem>>, %arg5: memref<1x8xf32, #tpu.memory_space<vmem>>, %arg6: memref<40x128xbf16, #tpu.memory_space<vmem>>, %arg7: memref<1x128xf32, #tpu.memory_space<vmem>>, %arg8: memref<1x256x128xbf16, #tpu.memory_space<vmem>>, %arg9: memref<18x32x8xf32, #tpu.memory_space<vmem>>) attributes {dimension_semantics = [#tpu.dimension_semantics<parallel>], iteration_bounds = array<i64: 2>, scalar_prefetch = 0 : i64, scratch_operands = 1 : i64, tpu.core_type = #tpu.core_type<tc>, window_params = [{transform_indices = @transform_0, window_bounds = array<i64: 1, 256, 32>}, {pipeline_mode = #tpu.pipeline_mode<synchronous>, transform_indices = @transform_1, window_bounds = array<i64: 32, 8>}, {pipeline_mode = #tpu.pipeline_mode<synchronous>, transform_indices = @transform_2, window_bounds = array<i64: 1, 8>}, {pipeline_mode = #tpu.pipeline_mode<synchronous>, transform_indices = @transform_3, window_bounds = array<i64: 9, 8, 8>}, {pipeline_mode = #tpu.pipeline_mode<synchronous>, transform_indices = @transform_4, window_bounds = array<i64: 1, 8>}, {pipeline_mode = #tpu.pipeline_mode<synchronous>, transform_indices = @transform_5, window_bounds = array<i64: 40, 128>}, {pipeline_mode = #tpu.pipeline_mode<synchronous>, transform_indices = @transform_6, window_bounds = array<i64: 1, 128>}, {transform_indices = @transform_7, window_bounds = array<i64: 1, 256, 128>}]} {
    %c0 = arith.constant 0 : index
    %c0_0 = arith.constant 0 : index
    %c0_1 = arith.constant 0 : index
    %0 = vector.load %arg1[%c0, %c0_0, %c0_1] : memref<1x256x32xbf16, #tpu.memory_space<vmem>>, vector<1x256x32xbf16>
    %1 = vector.shape_cast %0 : vector<1x256x32xbf16> to vector<256x32xbf16>
    %c0_2 = arith.constant 0 : index
    %c0_3 = arith.constant 0 : index
    %2 = vector.load %arg2[%c0_2, %c0_3] : memref<32x8xbf16, #tpu.memory_space<vmem>>, vector<32x8xbf16>
    %cst = arith.constant dense<0.000000e+00> : vector<256x8xf32>
    %3 = tpu.matmul %1, %2, %cst {dimension_numbers = #tpu.dot_dimension_numbers<[1], [0], [0], [1], [0, 0, 1, 1], [], []>} : vector<256x32xbf16>, vector<32x8xbf16>, vector<256x8xf32> -> vector<256x8xf32>
    %c0_4 = arith.constant 0 : index
    %c0_5 = arith.constant 0 : index
    %4 = vector.load %arg3[%c0_4, %c0_5] : memref<1x8xf32, #tpu.memory_space<vmem>>, vector<1x8xf32>
    %5 = vector.broadcast %4 : vector<1x8xf32> to vector<256x8xf32>
    %6 = arith.addf %3, %5 : vector<256x8xf32>
    %cst_6 = arith.constant 0.000000e+00 : f32
    %7 = vector.broadcast %cst_6 : f32 to vector<256x8xf32>
    %8 = arith.maximumf %6, %7 : vector<256x8xf32>
    %cst_7 = arith.constant 0.000000e+00 : f32
    %9 = vector.broadcast %cst_7 : f32 to vector<18x32x8xf32>
    %c0_8 = arith.constant 0 : index
    %c0_9 = arith.constant 0 : index
    %c0_10 = arith.constant 0 : index
    %10 = vector.load %arg9[%c0_8, %c0_9, %c0_10] : memref<18x32x8xf32, #tpu.memory_space<vmem>>, vector<18x32x8xf32>
    tpu.vector_store %arg9[%c0_8, %c0_9, %c0_10], %9 {strides = array<i32>} : memref<18x32x8xf32, #tpu.memory_space<vmem>>, vector<18x32x8xf32>,
    %11 = vector.shape_cast %8 : vector<256x8xf32> to vector<16x16x8xf32>
    %c1 = arith.constant 1 : index
    %c8 = arith.constant 8 : index
    %c0_11 = arith.constant 0 : index
    %12 = vector.load %arg9[%c1, %c8, %c0_11] : memref<18x32x8xf32, #tpu.memory_space<vmem>>, vector<16x16x8xf32>
    tpu.vector_store %arg9[%c1, %c8, %c0_11], %11 {strides = array<i32>} : memref<18x32x8xf32, #tpu.memory_space<vmem>>, vector<16x16x8xf32>,
    %c0_12 = arith.constant 0 : index
    %c0_13 = arith.constant 0 : index
    %c0_14 = arith.constant 0 : index
    %13 = vector.load %arg9[%c0_12, %c0_13, %c0_14] : memref<18x32x8xf32, #tpu.memory_space<vmem>>, vector<18x32x8xf32>
    %14 = arith.truncf %13 : vector<18x32x8xf32> to vector<18x32x8xbf16>
    %cst_15 = arith.constant 0.000000e+00 : f32
    %15 = vector.broadcast %cst_15 : f32 to vector<256x8xf32>
    %16 = vector.extract_strided_slice %14 {offsets = [0, 7, 0], sizes = [16, 16, 8], strides = [1, 1, 1]} : vector<18x32x8xbf16> to vector<16x16x8xbf16>
    %17 = vector.shape_cast %16 : vector<16x16x8xbf16> to vector<256x8xbf16>
    %c0_16 = arith.constant 0 : index
    %c0_17 = arith.constant 0 : index
    %c0_18 = arith.constant 0 : index
    %18 = vector.load %arg4[%c0_16, %c0_17, %c0_18] : memref<9x8x8xbf16, #tpu.memory_space<vmem>>, vector<1x8x8xbf16>
    %19 = vector.shape_cast %18 : vector<1x8x8xbf16> to vector<8x8xbf16>
    %cst_19 = arith.constant dense<0.000000e+00> : vector<256x8xf32>
    %20 = tpu.matmul %17, %19, %cst_19 {dimension_numbers = #tpu.dot_dimension_numbers<[1], [0], [0], [1], [0, 0, 1, 1], [], []>} : vector<256x8xbf16>, vector<8x8xbf16>, vector<256x8xf32> -> vector<256x8xf32>
    %21 = arith.addf %15, %20 : vector<256x8xf32>
    %22 = vector.extract_strided_slice %14 {offsets = [0, 8, 0], sizes = [16, 16, 8], strides = [1, 1, 1]} : vector<18x32x8xbf16> to vector<16x16x8xbf16>
    %23 = vector.shape_cast %22 : vector<16x16x8xbf16> to vector<256x8xbf16>
    %c1_20 = arith.constant 1 : index
    %c0_21 = arith.constant 0 : index
    %c0_22 = arith.constant 0 : index
    %24 = vector.load %arg4[%c1_20, %c0_21, %c0_22] : memref<9x8x8xbf16, #tpu.memory_space<vmem>>, vector<1x8x8xbf16>
    %25 = vector.shape_cast %24 : vector<1x8x8xbf16> to vector<8x8xbf16>
    %cst_23 = arith.constant dense<0.000000e+00> : vector<256x8xf32>
    %26 = tpu.matmul %23, %25, %cst_23 {dimension_numbers = #tpu.dot_dimension_numbers<[1], [0], [0], [1], [0, 0, 1, 1], [], []>} : vector<256x8xbf16>, vector<8x8xbf16>, vector<256x8xf32> -> vector<256x8xf32>
    %27 = arith.addf %21, %26 : vector<256x8xf32>
    %28 = vector.extract_strided_slice %14 {offsets = [0, 9, 0], sizes = [16, 16, 8], strides = [1, 1, 1]} : vector<18x32x8xbf16> to vector<16x16x8xbf16>
    %29 = vector.shape_cast %28 : vector<16x16x8xbf16> to vector<256x8xbf16>
    %c2 = arith.constant 2 : index
    %c0_24 = arith.constant 0 : index
    %c0_25 = arith.constant 0 : index
    %30 = vector.load %arg4[%c2, %c0_24, %c0_25] : memref<9x8x8xbf16, #tpu.memory_space<vmem>>, vector<1x8x8xbf16>
    %31 = vector.shape_cast %30 : vector<1x8x8xbf16> to vector<8x8xbf16>
    %cst_26 = arith.constant dense<0.000000e+00> : vector<256x8xf32>
    %32 = tpu.matmul %29, %31, %cst_26 {dimension_numbers = #tpu.dot_dimension_numbers<[1], [0], [0], [1], [0, 0, 1, 1], [], []>} : vector<256x8xbf16>, vector<8x8xbf16>, vector<256x8xf32> -> vector<256x8xf32>
    %33 = arith.addf %27, %32 : vector<256x8xf32>
    %34 = vector.extract_strided_slice %14 {offsets = [1, 7, 0], sizes = [16, 16, 8], strides = [1, 1, 1]} : vector<18x32x8xbf16> to vector<16x16x8xbf16>
    %35 = vector.shape_cast %34 : vector<16x16x8xbf16> to vector<256x8xbf16>
    %c3 = arith.constant 3 : index
    %c0_27 = arith.constant 0 : index
    %c0_28 = arith.constant 0 : index
    %36 = vector.load %arg4[%c3, %c0_27, %c0_28] : memref<9x8x8xbf16, #tpu.memory_space<vmem>>, vector<1x8x8xbf16>
    %37 = vector.shape_cast %36 : vector<1x8x8xbf16> to vector<8x8xbf16>
    %cst_29 = arith.constant dense<0.000000e+00> : vector<256x8xf32>
    %38 = tpu.matmul %35, %37, %cst_29 {dimension_numbers = #tpu.dot_dimension_numbers<[1], [0], [0], [1], [0, 0, 1, 1], [], []>} : vector<256x8xbf16>, vector<8x8xbf16>, vector<256x8xf32> -> vector<256x8xf32>
    %39 = arith.addf %33, %38 : vector<256x8xf32>
    %40 = vector.extract_strided_slice %14 {offsets = [1, 8, 0], sizes = [16, 16, 8], strides = [1, 1, 1]} : vector<18x32x8xbf16> to vector<16x16x8xbf16>
    %41 = vector.shape_cast %40 : vector<16x16x8xbf16> to vector<256x8xbf16>
    %c4 = arith.constant 4 : index
    %c0_30 = arith.constant 0 : index
    %c0_31 = arith.constant 0 : index
    %42 = vector.load %arg4[%c4, %c0_30, %c0_31] : memref<9x8x8xbf16, #tpu.memory_space<vmem>>, vector<1x8x8xbf16>
    %43 = vector.shape_cast %42 : vector<1x8x8xbf16> to vector<8x8xbf16>
    %cst_32 = arith.constant dense<0.000000e+00> : vector<256x8xf32>
    %44 = tpu.matmul %41, %43, %cst_32 {dimension_numbers = #tpu.dot_dimension_numbers<[1], [0], [0], [1], [0, 0, 1, 1], [], []>} : vector<256x8xbf16>, vector<8x8xbf16>, vector<256x8xf32> -> vector<256x8xf32>
    %45 = arith.addf %39, %44 : vector<256x8xf32>
    %46 = vector.extract_strided_slice %14 {offsets = [1, 9, 0], sizes = [16, 16, 8], strides = [1, 1, 1]} : vector<18x32x8xbf16> to vector<16x16x8xbf16>
    %47 = vector.shape_cast %46 : vector<16x16x8xbf16> to vector<256x8xbf16>
    %c5 = arith.constant 5 : index
    %c0_33 = arith.constant 0 : index
    %c0_34 = arith.constant 0 : index
    %48 = vector.load %arg4[%c5, %c0_33, %c0_34] : memref<9x8x8xbf16, #tpu.memory_space<vmem>>, vector<1x8x8xbf16>
    %49 = vector.shape_cast %48 : vector<1x8x8xbf16> to vector<8x8xbf16>
    %cst_35 = arith.constant dense<0.000000e+00> : vector<256x8xf32>
    %50 = tpu.matmul %47, %49, %cst_35 {dimension_numbers = #tpu.dot_dimension_numbers<[1], [0], [0], [1], [0, 0, 1, 1], [], []>} : vector<256x8xbf16>, vector<8x8xbf16>, vector<256x8xf32> -> vector<256x8xf32>
    %51 = arith.addf %45, %50 : vector<256x8xf32>
    %52 = vector.extract_strided_slice %14 {offsets = [2, 7, 0], sizes = [16, 16, 8], strides = [1, 1, 1]} : vector<18x32x8xbf16> to vector<16x16x8xbf16>
    %53 = vector.shape_cast %52 : vector<16x16x8xbf16> to vector<256x8xbf16>
    %c6 = arith.constant 6 : index
    %c0_36 = arith.constant 0 : index
    %c0_37 = arith.constant 0 : index
    %54 = vector.load %arg4[%c6, %c0_36, %c0_37] : memref<9x8x8xbf16, #tpu.memory_space<vmem>>, vector<1x8x8xbf16>
    %55 = vector.shape_cast %54 : vector<1x8x8xbf16> to vector<8x8xbf16>
    %cst_38 = arith.constant dense<0.000000e+00> : vector<256x8xf32>
    %56 = tpu.matmul %53, %55, %cst_38 {dimension_numbers = #tpu.dot_dimension_numbers<[1], [0], [0], [1], [0, 0, 1, 1], [], []>} : vector<256x8xbf16>, vector<8x8xbf16>, vector<256x8xf32> -> vector<256x8xf32>
    %57 = arith.addf %51, %56 : vector<256x8xf32>
    %58 = vector.extract_strided_slice %14 {offsets = [2, 8, 0], sizes = [16, 16, 8], strides = [1, 1, 1]} : vector<18x32x8xbf16> to vector<16x16x8xbf16>
    %59 = vector.shape_cast %58 : vector<16x16x8xbf16> to vector<256x8xbf16>
    %c7 = arith.constant 7 : index
    %c0_39 = arith.constant 0 : index
    %c0_40 = arith.constant 0 : index
    %60 = vector.load %arg4[%c7, %c0_39, %c0_40] : memref<9x8x8xbf16, #tpu.memory_space<vmem>>, vector<1x8x8xbf16>
    %61 = vector.shape_cast %60 : vector<1x8x8xbf16> to vector<8x8xbf16>
    %cst_41 = arith.constant dense<0.000000e+00> : vector<256x8xf32>
    %62 = tpu.matmul %59, %61, %cst_41 {dimension_numbers = #tpu.dot_dimension_numbers<[1], [0], [0], [1], [0, 0, 1, 1], [], []>} : vector<256x8xbf16>, vector<8x8xbf16>, vector<256x8xf32> -> vector<256x8xf32>
    %63 = arith.addf %57, %62 : vector<256x8xf32>
    %64 = vector.extract_strided_slice %14 {offsets = [2, 9, 0], sizes = [16, 16, 8], strides = [1, 1, 1]} : vector<18x32x8xbf16> to vector<16x16x8xbf16>
    %65 = vector.shape_cast %64 : vector<16x16x8xbf16> to vector<256x8xbf16>
    %c8_42 = arith.constant 8 : index
    %c0_43 = arith.constant 0 : index
    %c0_44 = arith.constant 0 : index
    %66 = vector.load %arg4[%c8_42, %c0_43, %c0_44] : memref<9x8x8xbf16, #tpu.memory_space<vmem>>, vector<1x8x8xbf16>
    %67 = vector.shape_cast %66 : vector<1x8x8xbf16> to vector<8x8xbf16>
    %cst_45 = arith.constant dense<0.000000e+00> : vector<256x8xf32>
    %68 = tpu.matmul %65, %67, %cst_45 {dimension_numbers = #tpu.dot_dimension_numbers<[1], [0], [0], [1], [0, 0, 1, 1], [], []>} : vector<256x8xbf16>, vector<8x8xbf16>, vector<256x8xf32> -> vector<256x8xf32>
    %69 = arith.addf %63, %68 : vector<256x8xf32>
    %c0_46 = arith.constant 0 : index
    %c0_47 = arith.constant 0 : index
    %70 = vector.load %arg5[%c0_46, %c0_47] : memref<1x8xf32, #tpu.memory_space<vmem>>, vector<1x8xf32>
    %71 = vector.broadcast %70 : vector<1x8xf32> to vector<256x8xf32>
    %72 = arith.addf %69, %71 : vector<256x8xf32>
    %cst_48 = arith.constant 0.000000e+00 : f32
    %73 = vector.broadcast %cst_48 : f32 to vector<256x8xf32>
    %74 = arith.maximumf %72, %73 : vector<256x8xf32>
    %75 = arith.truncf %74 : vector<256x8xf32> to vector<256x8xbf16>
    %76 = tpu.concatenate %75, %1 in 1 : vector<256x8xbf16>, vector<256x32xbf16> -> vector<256x40xbf16>
    %c0_49 = arith.constant 0 : index
    %c0_50 = arith.constant 0 : index
    %77 = vector.load %arg6[%c0_49, %c0_50] : memref<40x128xbf16, #tpu.memory_space<vmem>>, vector<40x128xbf16>
    %cst_51 = arith.constant dense<0.000000e+00> : vector<256x128xf32>
    %78 = tpu.matmul %76, %77, %cst_51 {dimension_numbers = #tpu.dot_dimension_numbers<[1], [0], [0], [1], [0, 0, 1, 1], [], []>} : vector<256x40xbf16>, vector<40x128xbf16>, vector<256x128xf32> -> vector<256x128xf32>
    %c0_52 = arith.constant 0 : index
    %c0_53 = arith.constant 0 : index
    %79 = vector.load %arg7[%c0_52, %c0_53] : memref<1x128xf32, #tpu.memory_space<vmem>>, vector<1x128xf32>
    %80 = vector.broadcast %79 : vector<1x128xf32> to vector<256x128xf32>
    %81 = arith.addf %78, %80 : vector<256x128xf32>
    %cst_54 = arith.constant 0.000000e+00 : f32
    %82 = vector.broadcast %cst_54 : f32 to vector<256x128xf32>
    %83 = arith.maximumf %81, %82 : vector<256x128xf32>
    %84 = arith.truncf %83 : vector<256x128xf32> to vector<256x128xbf16>
    %c0_55 = arith.constant 0 : index
    %c0_56 = arith.constant 0 : index
    %c0_57 = arith.constant 0 : index
    %85 = vector.load %arg8[%c0_55, %c0_56, %c0_57] : memref<1x256x128xbf16, #tpu.memory_space<vmem>>, vector<1x256x128xbf16>
    %86 = vector.shape_cast %85 : vector<1x256x128xbf16> to vector<256x128xbf16>
    %87 = vector.shape_cast %84 : vector<256x128xbf16> to vector<1x256x128xbf16>
    tpu.vector_store %arg8[%c0_55, %c0_56, %c0_57], %87 {strides = array<i32>} : memref<1x256x128xbf16, #tpu.memory_space<vmem>>, vector<1x256x128xbf16>,
    return
  }
  func.func @transform_0(%arg0: i32) -> (i32, i32, i32) {
    %c0_i32 = arith.constant 0 : i32
    %c0_i32_0 = arith.constant 0 : i32
    %c0_i32_1 = arith.constant 0 : i32
    return %arg0, %c0_i32, %c0_i32_0 : i32, i32, i32
  }
  func.func @transform_1(%arg0: i32) -> (i32, i32) {
    %c0_i32 = arith.constant 0 : i32
    %c0_i32_0 = arith.constant 0 : i32
    %c0_i32_1 = arith.constant 0 : i32
    return %c0_i32, %c0_i32_0 : i32, i32
  }
  func.func @transform_2(%arg0: i32) -> (i32, i32) {
    %c0_i32 = arith.constant 0 : i32
    %c0_i32_0 = arith.constant 0 : i32
    %c0_i32_1 = arith.constant 0 : i32
    return %c0_i32, %c0_i32_0 : i32, i32
  }
  func.func @transform_3(%arg0: i32) -> (i32, i32, i32) {
    %c0_i32 = arith.constant 0 : i32
    %c0_i32_0 = arith.constant 0 : i32
    %c0_i32_1 = arith.constant 0 : i32
    %c0_i32_2 = arith.constant 0 : i32
    return %c0_i32, %c0_i32_0, %c0_i32_1 : i32, i32, i32
  }
  func.func @transform_4(%arg0: i32) -> (i32, i32) {
    %c0_i32 = arith.constant 0 : i32
    %c0_i32_0 = arith.constant 0 : i32
    %c0_i32_1 = arith.constant 0 : i32
    return %c0_i32, %c0_i32_0 : i32, i32
  }
  func.func @transform_5(%arg0: i32) -> (i32, i32) {
    %c0_i32 = arith.constant 0 : i32
    %c0_i32_0 = arith.constant 0 : i32
    %c0_i32_1 = arith.constant 0 : i32
    return %c0_i32, %c0_i32_0 : i32, i32
  }
  func.func @transform_6(%arg0: i32) -> (i32, i32) {
    %c0_i32 = arith.constant 0 : i32
    %c0_i32_0 = arith.constant 0 : i32
    %c0_i32_1 = arith.constant 0 : i32
    return %c0_i32, %c0_i32_0 : i32, i32
  }
  func.func @transform_7(%arg0: i32) -> (i32, i32, i32) {
    %c0_i32 = arith.constant 0 : i32
    %c0_i32_0 = arith.constant 0 : i32
    %c0_i32_1 = arith.constant 0 : i32
    return %arg0, %c0_i32, %c0_i32_0 : i32, i32, i32
  }
}

</mosaic_0001>

<bundles_post_ra>
// kernel: block_forward.1
= control target key start
LH: loop header
LB: loop body
LE: loop exit
PB: predicated region body
PF: predicated region fallthrough
CT: control target
= control target key end

     0   :  { %s5231_s24 = smov 0   ;;  %s6742_s0 = inlined_call_operand.vmem [shape: bf16[2,256,32], index: 0, kind: input, shape index: {}]   ;;  %s6743_s1 = inlined_call_operand.vmem [shape: bf16[32,8], index: 1, kind: input, shape index: {}]   ;;  %s6744_s2 = inlined_call_operand.vmem [shape: f32[1,8], index: 2, kind: input, shape index: {}]   ;;  %s6745_s3 = inlined_call_operand.vmem [shape: bf16[9,8,8], index: 3, kind: input, shape index: {}]   ;;  %s6746_s4 = inlined_call_operand.vmem [shape: f32[1,8], index: 4, kind: input, shape index: {}]   ;;  %s6747_s5 = inlined_call_operand.vmem [shape: bf16[40,128], index: 5, kind: input, shape index: {}]   ;;  %s6748_s6 = inlined_call_operand.vmem [shape: f32[1,128], index: 6, kind: input, shape index: {}]   ;;  %s6749_s7 = inlined_call_operand.vmem [shape: bf16[2,256,128], index: 7, kind: output, shape index: {}]  }
   0x1 LB: > { %s3914_s25 = sadd.s32 4294967295, %s5187_s24   ;;  %p3918_p0 = scmp.ge.s32.totalorder %s5187_s24, 1  ;;  %s5187_s24 = sphi %s5231_s24, %s17_s24  }
   0x2   : > { %p237_p1 = scmp.lt.s32.totalorder %s5187_s24, 3 }
   0x4   : > { %p238_p2 = pnand %p3918_p0, %p237_p1 }
   0x6   : > { %241 = sbr.rel (%p238_p2) target bundleno = 1100 (0x44c), region = 48 }
   0xd   : > { %v5143_v0 = vld [vmem:[%s6743_s1] sm:$0xff]   ;;  %p269_p3 = scmp.lt.s32.totalorder %s3914_s25, 1  ;;  %v5144_v1 = vld [vmem:[%s6743_s1 + $0x8] sm:$0xff]   ;;  %vm415_vm0 = vcmask 261120   ;;  %vm657_vm1 = vcmask 64512   ;;  %v5189_v18 = vmov 0.0  }
   0xe   : > { %4484 = vmatprep.subr.bf16.mxu0 %v5143_v0  ;;  %667 = vst.msk [vmem:[#allocation2 + $0x48] sm:$0xff] %vm657_vm1, %v5189_v18  ;;  %658 = vst.msk [vmem:[#allocation2] sm:$0xff] %vm657_vm1, %v5189_v18  ;;  %vm1177_vm2 = vcmask 1043456   ;;  %v3958_v24 = vld [vmem:[%s6745_s3 + $0x4] sm:$0xf]  ;;  %s5190_s18 = smov 8  }
   0xf   : > { %s6967_s25 = smov (!%p269_p3, %s3914_s25), 1  ;;  %4485 = vmatpush3.bf16.msra.mxu0 %v5143_v0  ;;  %659 = vst.msk [vmem:[#allocation2 + $0x8] sm:$0xff] %vm657_vm1, %v5189_v18  ;;  %660 = vst.msk [vmem:[#allocation2 + $0x10] sm:$0xff] %vm657_vm1, %v5189_v18  ;;  %v1278_v26 = vsel %vm1177_vm2, %v3958_v24, 0  ;;  %v4008_v30 = vld [vmem:[%s6745_s3 + $0xc] sm:$0xf] }
  0x10   : > { %4486 = vmatprep.subr.bf16.mxu0 %v5144_v1  ;;  %s4165_s30 = sshll.u32 %s6967_s25, 7  ;;  %661 = vst.msk [vmem:[#allocation2 + $0x18] sm:$0xff] %vm657_vm1, %v5189_v18  ;;  %662 = vst.msk [vmem:[#allocation2 + $0x20] sm:$0xff] %vm657_vm1, %v5189_v18  ;;  %5126 = vmatprep.subr.msk.bf16.mxu1 %vm1177_vm2, %v4008_v30  ;;  %v5449_v31 = vsel %vm1177_vm2, %v4008_v30, 0  ;;  %v4025_v32 = vld [vmem:[%s6745_s3 + $0x10] sm:$0xf] }
  0x11   : > { %s5253_s10 = scalar_lea.vmem %s6742_s0, %s4165_s30  ;;  %663 = vst.msk [vmem:[#allocation2 + $0x28] sm:$0xff] %vm657_vm1, %v5189_v18  ;;  %664 = vst.msk [vmem:[#allocation2 + $0x30] sm:$0xff] %vm657_vm1, %v5189_v18  ;;  %4865 = vmatpush3.bf16.msra.mxu1 %v5449_v31  ;;  %v1144_v33 = vld [vmem:[%s6745_s3] sm:$0xf]  ;;  %vm871_vm3 = vsmask.f32 4352  ;;  %s6693_s28 = scalar_lea.vmem %s6749_s7, %s4165_s30 }
  0x12   : > { %v5145_v2 = vld [vmem:[%s5253_s10] sm:$0xff]   ;;  %v5146_v3 = vld [vmem:[%s5253_s10 + $0x8] sm:$0xff]   ;;  %v5147_v4 = vld [vmem:[%s5253_s10 + $0x10] sm:$0xff]   ;;  %665 = vst.msk [vmem:[#allocation2 + $0x38] sm:$0xff] %vm657_vm1, %v5189_v18  ;;  %5127 = vmatprep.subr.msk.bf16.mxu1 %vm1177_vm2, %v4025_v32  ;;  %vm1653_vm4 = vsmask.f32 3328 }
  0x13   : > { %4487 = vmatpush3.bf16.msra.mxu0 %v5144_v1  ;;  %4488 = vmatprep.mubr.msk.bf16.mxu0 %vm415_vm0, %v5145_v2  ;;  %v5148_v5 = vld [vmem:[%s5253_s10 + $0x18] sm:$0xff]   ;;  %v5149_v6 = vld [vmem:[%s5253_s10 + $0x20] sm:$0xff]   ;;  %v5150_v7 = vld [vmem:[%s5253_s10 + $0x28] sm:$0xff]   ;;  %666 = vst.msk [vmem:[#allocation2 + $0x40] sm:$0xff] %vm657_vm1, %v5189_v18  ;;  %vm3470_vm5 = vcmask 326656  }
  0x14   : > { %v5151_v8 = vld [vmem:[%s5253_s10 + $0x30] sm:$0xff]   ;;  %v5152_v9 = vld [vmem:[%s5253_s10 + $0x38] sm:$0xff]   ;;  %v5153_v10 = vld [vmem:[%s5253_s10 + $0x40] sm:$0xff]   ;;  %668 = vst.msk [vmem:[#allocation2 + $0x50] sm:$0xff] %vm657_vm1, %v5189_v18  ;;  %5122 = vmatprep.subr.msk.bf16.mxu0 %vm1177_vm2, %v3958_v24 }
  0x15   : > { %v5154_v11 = vld [vmem:[%s5253_s10 + $0x48] sm:$0xff]   ;;  %v5155_v12 = vld [vmem:[%s5253_s10 + $0x50] sm:$0xff]   ;;  %v5156_v13 = vld [vmem:[%s5253_s10 + $0x58] sm:$0xff]   ;;  %669 = vst.msk [vmem:[#allocation2 + $0x58] sm:$0xff] %vm657_vm1, %v5189_v18 }
  0x16   : > { %4489 = vmatmul.mubr.msk.bf16.vlgmr.msra.gmra.mrb[0].mxu0 %vm415_vm0, %v5146_v3  ;;  %v5157_v14 = vld [vmem:[%s5253_s10 + $0x60] sm:$0xff]   ;;  %v5158_v15 = vld [vmem:[%s5253_s10 + $0x68] sm:$0xff]   ;;  %v5159_v16 = vld [vmem:[%s5253_s10 + $0x70] sm:$0xff]   ;;  %670 = vst.msk [vmem:[#allocation2 + $0x60] sm:$0xff] %vm657_vm1, %v5189_v18 }
  0x17   : > { %4492 = vmatprep.mubr.msk.bf16.mxu0 %vm415_vm0, %v5147_v4  ;;  %v5160_v17 = vld [vmem:[%s5253_s10 + $0x78] sm:$0xff]   ;;  %671 = vst.msk [vmem:[#allocation2 + $0x68] sm:$0xff] %vm657_vm1, %v5189_v18  ;;  %672 = vst.msk [vmem:[#allocation2 + $0x70] sm:$0xff] %vm657_vm1, %v5189_v18  ;;  %v763_v19 = vld [vmem:[#allocation2] sm:$0xff]  ;;  %4521 = vmatpush3.bf16.msra.mxu0 %v1278_v26 }
  0x18   : > { %673 = vst.msk [vmem:[#allocation2 + $0x78] sm:$0xff] %vm657_vm1, %v5189_v18  ;;  %674 = vst.msk [vmem:[#allocation2 + $0x80] sm:$0xff] %vm657_vm1, %v5189_v18  ;;  %v764_v20 = vld [vmem:[#allocation2 + $0x8] sm:$0xff]  ;;  %v765_v21 = vld [vmem:[#allocation2 + $0x10] sm:$0xff]  ;;  %5123 = vmatprep.subr.msk.bf16.mxu0 %vm1177_vm2, %v1144_v33 }
  0x19   : > { %675 = vst.msk [vmem:[#allocation2 + $0x88] sm:$0xff] %vm657_vm1, %v5189_v18  ;;  %676 = vst.msk [vmem:[#allocation2 + $0x90] sm:$0xff] %vm657_vm1, %v5189_v18  ;;  %v766_v22 = vld [vmem:[#allocation2 + $0x18] sm:$0xff]  ;;  %v5431_v23 = vpack.c.bf16 %v764_v20, %v763_v19  ;;  %v5463_v34 = vld [vmem:[%s6744_s2] ss:$0 sm:$0xff] }
  0x1a   : > { %677 = vst.msk [vmem:[#allocation2 + $0x98] sm:$0xff] %vm657_vm1, %v5189_v18  ;;  %678 = vst.msk [vmem:[#allocation2 + $0xa0] sm:$0xff] %vm657_vm1, %v5189_v18  ;;  %v5436_v25 = vpack.c.bf16 %v766_v22, %v765_v21  ;;  %v771_v60 = vld [vmem:[#allocation2 + $0x40] sm:$0xff] }
  0x1b   : > { %679 = vst.msk [vmem:[#allocation2 + $0xa8] sm:$0xff] %vm657_vm1, %v5189_v18  ;;  %680 = vst.msk [vmem:[#allocation2 + $0xb0] sm:$0xff] %vm657_vm1, %v5189_v18  ;;  %v1178_v27 = vrot.slane %v5431_v23, 4  ;;  %v6766_v38 = vshrl.u32 %v5431_v23, 16  ;;  %v6765_v41 = vshll.u32 %v5431_v23, 16  ;;  %v767_v2 = vld [vmem:[#allocation2 + $0x20] sm:$0xff] }
  0x1c   : > { %681 = vst.msk [vmem:[#allocation2 + $0xb8] sm:$0xff] %vm657_vm1, %v5189_v18  ;;  %682 = vst.msk [vmem:[#allocation2 + $0xc0] sm:$0xff] %vm657_vm1, %v5189_v18  ;;  %v1179_v28 = vrot.slane %v5436_v25, 4  ;;  %v6764_v42 = vshrl.u32 %v5436_v25, 16  ;;  %v6762_v43 = vshll.u32 %v5436_v25, 16 }
  0x1d   : > { %683 = vst.msk [vmem:[#allocation2 + $0xc8] sm:$0xff] %vm657_vm1, %v5189_v18  ;;  %684 = vst.msk [vmem:[#allocation2 + $0xd0] sm:$0xff] %vm657_vm1, %v5189_v18  ;;  %v875_v50 = vrot.slane %v6766_v38, 3  ;;  %v878_v52 = vrot.slane %v6765_v41, 4 }
  0x1e   : > { %4493 = vmatmul.mubr.msk.bf16.gmra.mrb[4].mxu0 %vm415_vm0, %v5148_v5  ;;  %685 = vst.msk [vmem:[#allocation2 + $0xd8] sm:$0xff] %vm657_vm1, %v5189_v18  ;;  %686 = vst.msk [vmem:[#allocation2 + $0xe0] sm:$0xff] %vm657_vm1, %v5189_v18  ;;  %v1180_v29 = vsel %vm1177_vm2, %v1178_v27, %v1179_v28  ;;  %v883_v53 = vrot.slane %v6764_v42, 3  ;;  %v886_v54 = vrot.slane %v6762_v43, 4 }
  0x1f   : > { %4496 = vmatprep.mubr.msk.bf16.mxu0 %vm415_vm0, %v5149_v6  ;;  %687 = vst.msk [vmem:[#allocation2 + $0xe8] sm:$0xff] %vm657_vm1, %v5189_v18  ;;  %688 = vst.msk [vmem:[#allocation2 + $0xf0] sm:$0xff] %vm657_vm1, %v5189_v18  ;;  %v879_v61 = vor.u32 %v878_v52, %v875_v50  ;;  %v774_v6 = vld [vmem:[#allocation2 + $0x58] sm:$0xff]  ;;  %v775_v50 = vld [vmem:[#allocation2 + $0x60] sm:$0xff] }
  0x20   : > { %689 = vst.msk [vmem:[#allocation2 + $0xf8] sm:$0xff] %vm657_vm1, %v5189_v18  ;;  %690 = vst.msk [vmem:[#allocation2 + $0x100] sm:$0xff] %vm657_vm1, %v5189_v18  ;;  %v887_v62 = vor.u32 %v886_v54, %v883_v53 }
  0x21   : > { %691 = vst.msk [vmem:[#allocation2 + $0x108] sm:$0xff] %vm657_vm1, %v5189_v18  ;;  %692 = vst.msk [vmem:[#allocation2 + $0x110] sm:$0xff] %vm657_vm1, %v5189_v18 }
  0x22   : > { %693 = vst.msk [vmem:[#allocation2 + $0x118] sm:$0xff] %vm657_vm1, %v5189_v18  ;;  %694 = vst.msk [vmem:[#allocation2 + $0x120] sm:$0xff] %vm657_vm1, %v5189_v18 }
  0x23   : > { %695 = vst.msk [vmem:[#allocation2 + $0x128] sm:$0xff] %vm657_vm1, %v5189_v18  ;;  %696 = vst.msk [vmem:[#allocation2 + $0x130] sm:$0xff] %vm657_vm1, %v5189_v18 }
  0x24   : > { %697 = vst.msk [vmem:[#allocation2 + $0x138] sm:$0xff] %vm657_vm1, %v5189_v18  ;;  %698 = vst.msk [vmem:[#allocation2 + $0x140] sm:$0xff] %vm657_vm1, %v5189_v18 }
  0x25   : > { %699 = vst.msk [vmem:[#allocation2 + $0x148] sm:$0xff] %vm657_vm1, %v5189_v18  ;;  %700 = vst.msk [vmem:[#allocation2 + $0x150] sm:$0xff] %vm657_vm1, %v5189_v18 }
  0x26   : > { %4497 = vmatmul.mubr.msk.bf16.gmra.mrb[8].mxu0 %vm415_vm0, %v5150_v7  ;;  %701 = vst.msk [vmem:[#allocation2 + $0x158] sm:$0xff] %vm657_vm1, %v5189_v18  ;;  %702 = vst.msk [vmem:[#allocation2 + $0x160] sm:$0xff] %vm657_vm1, %v5189_v18 }
  0x27   : > { %4500 = vmatprep.mubr.msk.bf16.mxu0 %vm415_vm0, %v5151_v8  ;;  %703 = vst.msk [vmem:[#allocation2 + $0x168] sm:$0xff] %vm657_vm1, %v5189_v18  ;;  %704 = vst.msk [vmem:[#allocation2 + $0x170] sm:$0xff] %vm657_vm1, %v5189_v18 }
  0x28   : > { %705 = vst.msk [vmem:[#allocation2 + $0x178] sm:$0xff] %vm657_vm1, %v5189_v18  ;;  %706 = vst.msk [vmem:[#allocation2 + $0x180] sm:$0xff] %vm657_vm1, %v5189_v18 }
  0x29   : > { %707 = vst.msk [vmem:[#allocation2 + $0x188] sm:$0xff] %vm657_vm1, %v5189_v18  ;;  %708 = vst.msk [vmem:[#allocation2 + $0x190] sm:$0xff] %vm657_vm1, %v5189_v18  ;;  %v799_v42 = vld [vmem:[#allocation2 + $0x120] sm:$0xff] }
  0x2a   : > { %709 = vst.msk [vmem:[#allocation2 + $0x198] sm:$0xff] %vm657_vm1, %v5189_v18  ;;  %710 = vst.msk [vmem:[#allocation2 + $0x1a0] sm:$0xff] %vm657_vm1, %v5189_v18 }
  0x2b   : > { %711 = vst.msk [vmem:[#allocation2 + $0x1a8] sm:$0xff] %vm657_vm1, %v5189_v18  ;;  %712 = vst.msk [vmem:[#allocation2 + $0x1b0] sm:$0xff] %vm657_vm1, %v5189_v18 }
  0x2c   : > { %713 = vst.msk [vmem:[#allocation2 + $0x1b8] sm:$0xff] %vm657_vm1, %v5189_v18  ;;  %714 = vst.msk [vmem:[#allocation2 + $0x1c0] sm:$0xff] %vm657_vm1, %v5189_v18 }
  0x2d   : > { %715 = vst.msk [vmem:[#allocation2 + $0x1c8] sm:$0xff] %vm657_vm1, %v5189_v18  ;;  %716 = vst.msk [vmem:[#allocation2 + $0x1d0] sm:$0xff] %vm657_vm1, %v5189_v18 }
  0x2e   : > { %4501 = vmatmul.mubr.msk.bf16.gmra.mrb[12].mxu0 %vm415_vm0, %v5152_v9  ;;  %717 = vst.msk [vmem:[#allocation2 + $0x1d8] sm:$0xff] %vm657_vm1, %v5189_v18  ;;  %718 = vst.msk [vmem:[#allocation2 + $0x1e0] sm:$0xff] %vm657_vm1, %v5189_v18  ;;  %v770_v9 = vld [vmem:[#allocation2 + $0x38] sm:$0xff] }
  0x2f   : > { %4504 = vmatprep.mubr.msk.bf16.mxu0 %vm415_vm0, %v5153_v10  ;;  %719 = vst.msk [vmem:[#allocation2 + $0x1e8] sm:$0xff] %vm657_vm1, %v5189_v18  ;;  %720 = vst.msk [vmem:[#allocation2 + $0x1f0] sm:$0xff] %vm657_vm1, %v5189_v18 }
  0x30   : > { %721 = vst.msk [vmem:[#allocation2 + $0x1f8] sm:$0xff] %vm657_vm1, %v5189_v18  ;;  %722 = vst.msk [vmem:[#allocation2 + $0x200] sm:$0xff] %vm657_vm1, %v5189_v18 }
  0x31   : > { %723 = vst.msk [vmem:[#allocation2 + $0x208] sm:$0xff] %vm657_vm1, %v5189_v18  ;;  %724 = vst.msk [vmem:[#allocation2 + $0x210] sm:$0xff] %vm657_vm1, %v5189_v18 }
  0x32   : > { %725 = vst.msk [vmem:[#allocation2 + $0x218] sm:$0xff] %vm657_vm1, %v5189_v18  ;;  %726 = vst.msk [vmem:[#allocation2 + $0x220] sm:$0xff] %vm657_vm1, %v5189_v18 }
  0x33   : > { %727 = vst.msk [vmem:[#allocation2 + $0x228] sm:$0xff] %vm657_vm1, %v5189_v18  ;;  %728 = vst.msk [vmem:[#allocation2 + $0x230] sm:$0xff] %vm657_vm1, %v5189_v18 }
  0x34   : > { %729 = vst.msk [vmem:[#allocation2 + $0x238] sm:$0xff] %vm657_vm1, %v5189_v18  ;;  %6854 = vst [vmem:[#allocation3_spill] sm:$0xff] %v5449_v31 }
  0x36   : > { %4505 = vmatmul.mubr.msk.bf16.gmra.mrb[16].mxu0 %vm415_vm0, %v5154_v11  ;;  %v5493_v11 = vsel %vm1177_vm2, %v4025_v32, 0 }
  0x37   : > { %4508 = vmatprep.mubr.msk.bf16.mxu0 %vm415_vm0, %v5155_v12 }
  0x3e   : > { %4509 = vmatmul.mubr.msk.bf16.gmra.mrb[20].mxu0 %vm415_vm0, %v5156_v13 }
  0x3f   : > { %4512 = vmatprep.mubr.msk.bf16.mxu0 %vm415_vm0, %v5157_v14 }
  0x46   : > { %4513 = vmatmul.mubr.msk.bf16.gmra.mrb[24].mxu0 %vm415_vm0, %v5158_v15  ;;  %v1490_v15 = vsel %vm1177_vm2, %v1144_v33, 0 }
  0x47   : > { %4516 = vmatprep.mubr.msk.bf16.mxu0 %vm415_vm0, %v5159_v16  ;;  %v5500_v16 = vsel %vm871_vm3, %v879_v61, %v887_v62  ;;  %v778_v61 = vld [vmem:[#allocation2 + $0x78] sm:$0xff] }
  0x4e   : > { %4517 = vmatmul.mubr.msk.bf16.gmra.mrb[28].mxu0 %vm415_vm0, %v5160_v17 }
  0x4f   : > { %4522 = vmatprep.mubr.msk.bf16.mxu0 %vm657_vm1, %v1180_v29 }
  0xe9   : > { %v4490_v35 = vpop.f32.mrb[0].mxu0 }
  0xea   : > { %v507_v36 = vadd.f32 %v4490_v35, %v5463_v34  ;;  %v498_v37 = vpop.f32.mrb[1].mxu0 }
  0xeb   : > { %v499_v39 = vadd.f32 %v5463_v34, %v498_v37  ;;  %v4491_v40 = vpop.f32.mrb[2].mxu0 }
  0xec   : > { %v627_v44 = vmax.f32 %v507_v36, 0.0  ;;  %v510_v45 = vadd.f32 %v4491_v40, %v5463_v34  ;;  %v501_v46 = vpop.f32.mrb[3].mxu0  ;;  %v779_v40 = vld [vmem:[#allocation2 + $0x80] sm:$0xff] }
  0xed   : > { %v625_v47 = vmax.f32 %v499_v39, 0.0  ;;  %v502_v48 = vadd.f32 %v5463_v34, %v501_v46 }
  0xee   : > { %733 = vst.msk [vmem:[#allocation2 + $0x48] sm:$0xff] %vm657_vm1, %v627_v44  ;;  %v628_v49 = vmax.f32 %v510_v45, 0.0 }
  0xef   : > { %731 = vst.msk [vmem:[#allocation2 + $0x28] sm:$0xff] %vm657_vm1, %v625_v47  ;;  %v626_v51 = vmax.f32 %v502_v48, 0.0 }
  0xf0   : > { %734 = vst.msk [vmem:[#allocation2 + $0x50] sm:$0xff] %vm657_vm1, %v628_v49 }
  0xf1   : > { %732 = vst.msk [vmem:[#allocation2 + $0x30] sm:$0xff] %vm657_vm1, %v626_v51  ;;  %v4494_v55 = vpop.f32.mrb[4].mxu0 }
  0xf2   : > { %v523_v56 = vadd.f32 %v4494_v55, %v5463_v34  ;;  %v514_v57 = vpop.f32.mrb[5].mxu0 }
  0xf3   : > { %v515_v58 = vadd.f32 %v5463_v34, %v514_v57  ;;  %v4495_v59 = vpop.f32.mrb[6].mxu0 }
  0xf4   : > { %v631_v63 = vmax.f32 %v523_v56, 0.0  ;;  %v526_v0 = vadd.f32 %v4495_v59, %v5463_v34  ;;  %v517_v1 = vpop.f32.mrb[7].mxu0  ;;  %v782_v56 = vld [vmem:[#allocation2 + $0x98] sm:$0xff] }
  0xf5   : > { %v629_v3 = vmax.f32 %v515_v58, 0.0  ;;  %v518_v4 = vadd.f32 %v5463_v34, %v517_v1  ;;  %v772_v5 = vld [vmem:[#allocation2 + $0x48] sm:$0xff] }
  0xf6   : > { %737 = vst.msk [vmem:[#allocation2 + $0x88] sm:$0xff] %vm657_vm1, %v631_v63  ;;  %v632_v7 = vmax.f32 %v526_v0, 0.0  ;;  %v768_v8 = vld [vmem:[#allocation2 + $0x28] sm:$0xff]  ;;  %v5490_v10 = vpack.c.bf16 %v772_v5, %v771_v60 }
  0xf7   : > { %735 = vst.msk [vmem:[#allocation2 + $0x68] sm:$0xff] %vm657_vm1, %v629_v3  ;;  %v630_v12 = vmax.f32 %v518_v4, 0.0  ;;  %v5496_v13 = vpack.c.bf16 %v768_v8, %v767_v2  ;;  %v773_v14 = vld [vmem:[#allocation2 + $0x50] sm:$0xff]  ;;  %v5542_v58 = vld [vmem:[%s6745_s3 + $0x8] sm:$0xf] }
  0xf8   : > { %738 = vst.msk [vmem:[#allocation2 + $0x90] sm:$0xff] %vm657_vm1, %v632_v7  ;;  %v769_v17 = vld [vmem:[#allocation2 + $0x30] sm:$0xff]  ;;  %v5503_v18 = vpack.c.bf16 %v774_v6, %v773_v14  ;;  %v1184_v19 = vrot.slane %v5490_v10, 4  ;;  %v6760_v20 = vshrl.u32 %v5490_v10, 16  ;;  %v6759_v21 = vshll.u32 %v5490_v10, 16 }
  0xf9   : > { %736 = vst.msk [vmem:[#allocation2 + $0x70] sm:$0xff] %vm657_vm1, %v630_v12  ;;  %v4498_v22 = vpop.f32.mrb[8].mxu0  ;;  %v5509_v24 = vpack.c.bf16 %v770_v9, %v769_v17  ;;  %v1181_v26 = vrot.slane %v5496_v13, 4  ;;  %v6775_v27 = vshrl.u32 %v5496_v13, 16  ;;  %v6774_v28 = vshll.u32 %v5496_v13, 16 }
  0xfa   : > { %v539_v29 = vadd.f32 %v4498_v22, %v5463_v34  ;;  %v530_v30 = vpop.f32.mrb[9].mxu0  ;;  %v1185_v32 = vrot.slane %v5503_v18, 4  ;;  %v5518_v33 = vrot.slane %v6760_v20, 3  ;;  %v5522_v35 = vrot.slane %v6759_v21, 4 }
  0xfb   : > { %v531_v36 = vadd.f32 %v5463_v34, %v530_v30  ;;  %v4499_v37 = vpop.f32.mrb[10].mxu0  ;;  %v1182_v39 = vrot.slane %v5509_v24, 4  ;;  %v892_v44 = vrot.slane %v6775_v27, 3  ;;  %v895_v45 = vrot.slane %v6774_v28, 4 }
  0xfc   : > { %v635_v46 = vmax.f32 %v539_v29, 0.0  ;;  %v542_v47 = vadd.f32 %v4499_v37, %v5463_v34  ;;  %v533_v48 = vpop.f32.mrb[11].mxu0  ;;  %v5532_v49 = vsel %vm1177_vm2, %v1184_v19, %v1185_v32  ;;  %v6769_v51 = vshrl.u32 %v5509_v24, 16 }
  0xfd   : > { %v633_v52 = vmax.f32 %v531_v36, 0.0  ;;  %v534_v53 = vadd.f32 %v5463_v34, %v533_v48  ;;  %v5537_v54 = vsel %vm1177_vm2, %v1181_v26, %v1182_v39  ;;  %v780_v55 = vld [vmem:[#allocation2 + $0x88] sm:$0xff]  ;;  %v896_v57 = vor.u32 %v895_v45, %v892_v44  ;;  %v787_v39 = vld [vmem:[#allocation2 + $0xc0] sm:$0xff] }
  0xfe   : > { %741 = vst.msk [vmem:[#allocation2 + $0xc8] sm:$0xff] %vm657_vm1, %v635_v46  ;;  %v636_v59 = vmax.f32 %v542_v47, 0.0  ;;  %4523 = vmatmul.mubr.msk.bf16.vlgmr.msra.gmra.mrb[32].mxu0 %vm657_vm1, %v5537_v54  ;;  %v776_v60 = vld [vmem:[#allocation2 + $0x68] sm:$0xff]  ;;  %v5547_v62 = vpack.c.bf16 %v780_v55, %v779_v40  ;;  %v900_v63 = vrot.slane %v6769_v51, 3  ;;  %v6768_v0 = vshll.u32 %v5509_v24, 16 }
  0xff   : > { %739 = vst.msk [vmem:[#allocation2 + $0xa8] sm:$0xff] %vm657_vm1, %v633_v52  ;;  %v634_v1 = vmax.f32 %v534_v53, 0.0  ;;  %4526 = vmatprep.mubr.msk.bf16.mxu0 %vm657_vm1, %v5532_v49  ;;  %v5555_v2 = vpack.c.bf16 %v776_v60, %v775_v50  ;;  %v781_v3 = vld [vmem:[#allocation2 + $0x90] sm:$0xff]  ;;  %4555 = vmatpush3.bf16.msra.mxu0 %v1490_v15  ;;  %v913_v4 = vor.u32 %v5522_v35, %v5518_v33  ;;  %v6758_v5 = vshrl.u32 %v5503_v18, 16  ;;  %v783_v50 = vld [vmem:[#allocation2 + $0xa0] sm:$0xff]  ;;  %v790_v60 = vld [vmem:[#allocation2 + $0xd8] sm:$0xff] }
 0x100   : > { %742 = vst.msk [vmem:[#allocation2 + $0xd0] sm:$0xff] %vm657_vm1, %v636_v59  ;;  %v777_v6 = vld [vmem:[#allocation2 + $0x70] sm:$0xff]  ;;  %v5561_v7 = vpack.c.bf16 %v782_v56, %v781_v3  ;;  %v1190_v8 = vrot.slane %v5547_v62, 4  ;;  %v903_v9 = vrot.slane %v6768_v0, 4  ;;  %v6757_v12 = vshll.u32 %v5503_v18, 16  ;;  %5124 = vmatprep.subr.msk.bf16.mxu0 %vm1177_vm2, %v5542_v58  ;;  %v786_v3 = vld [vmem:[#allocation2 + $0xb8] sm:$0xff] }
 0x101   : > { %740 = vst.msk [vmem:[#allocation2 + $0xb0] sm:$0xff] %vm657_vm1, %v634_v1  ;;  %v4502_v14 = vpop.f32.mrb[12].mxu0  ;;  %v5570_v15 = vpack.c.bf16 %v778_v61, %v777_v6  ;;  %v1187_v17 = vrot.slane %v5555_v2, 4  ;;  %v917_v19 = vrot.slane %v6758_v5, 3  ;;  %v6756_v22 = vshrl.u32 %v5555_v2, 16  ;;  %v803_v0 = vld [vmem:[#allocation2 + $0x140] sm:$0xff] }
 0x102   : > { %v555_v26 = vadd.f32 %v4502_v14, %v5463_v34  ;;  %v546_v29 = vpop.f32.mrb[13].mxu0  ;;  %v1191_v30 = vrot.slane %v5561_v7, 4  ;;  %v904_v32 = vor.u32 %v903_v9, %v900_v63  ;;  %v920_v33 = vrot.slane %v6757_v12, 4 }
 0x103   : > { %v547_v35 = vadd.f32 %v5463_v34, %v546_v29  ;;  %v4503_v36 = vpop.f32.mrb[14].mxu0  ;;  %v1188_v37 = vrot.slane %v5570_v15, 4  ;;  %v5584_v40 = vrot.slane %v6756_v22, 3  ;;  %v6755_v44 = vshll.u32 %v5555_v2, 16 }
 0x104   : > { %v639_v45 = vmax.f32 %v555_v26, 0.0  ;;  %v558_v46 = vadd.f32 %v4503_v36, %v5463_v34  ;;  %v549_v47 = vpop.f32.mrb[15].mxu0  ;;  %v5589_v48 = vsel %vm1177_vm2, %v1190_v8, %v1191_v30  ;;  %v5592_v52 = vsel %vm871_vm3, %v896_v57, %v904_v32 }
 0x105   : > { %v637_v53 = vmax.f32 %v547_v35, 0.0  ;;  %v550_v55 = vadd.f32 %v5463_v34, %v549_v47  ;;  %v5596_v56 = vsel %vm1177_vm2, %v1187_v17, %v1188_v37  ;;  %v788_v59 = vld [vmem:[#allocation2 + $0xc8] sm:$0xff]  ;;  %v921_v61 = vor.u32 %v920_v33, %v917_v19 }
 0x106   : > { %745 = vst.msk [vmem:[#allocation2 + $0x108] sm:$0xff] %vm657_vm1, %v639_v45  ;;  %v640_v63 = vmax.f32 %v558_v46, 0.0  ;;  %4527 = vmatmul.mubr.msk.bf16.gmra.mrb[36].mxu0 %vm657_vm1, %v5596_v56  ;;  %v784_v1 = vld [vmem:[#allocation2 + $0xa8] sm:$0xff]  ;;  %v5601_v6 = vpack.c.bf16 %v788_v59, %v787_v39  ;;  %v929_v57 = vrot.slane %v6755_v44, 4  ;;  %v6754_v8 = vshrl.u32 %v5570_v15, 16 }
 0x107   : > { %743 = vst.msk [vmem:[#allocation2 + $0xe8] sm:$0xff] %vm657_vm1, %v637_v53  ;;  %v638_v9 = vmax.f32 %v550_v55, 0.0  ;;  %4530 = vmatprep.mubr.msk.bf16.mxu0 %vm657_vm1, %v5589_v48  ;;  %v5609_v14 = vpack.c.bf16 %v784_v1, %v783_v50  ;;  %v789_v17 = vld [vmem:[#allocation2 + $0xd0] sm:$0xff]  ;;  %v5612_v19 = vsel %vm871_vm3, %v913_v4, %v921_v61  ;;  %v6750_v26 = vshll.u32 %v5570_v15, 16  ;;  %v795_v61 = vld [vmem:[#allocation2 + $0x100] sm:$0xff] }
 0x108   : > { %746 = vst.msk [vmem:[#allocation2 + $0x110] sm:$0xff] %vm657_vm1, %v640_v63  ;;  %v785_v29 = vld [vmem:[#allocation2 + $0xb0] sm:$0xff]  ;;  %v5616_v30 = vpack.c.bf16 %v790_v60, %v789_v17  ;;  %v1196_v32 = vrot.slane %v5601_v6, 4  ;;  %v930_v33 = vor.u32 %v929_v57, %v5584_v40  ;;  %v934_v35 = vrot.slane %v6754_v8, 3 }
 0x109   : > { %744 = vst.msk [vmem:[#allocation2 + $0xf0] sm:$0xff] %vm657_vm1, %v638_v9  ;;  %v4506_v36 = vpop.f32.mrb[16].mxu0  ;;  %v5623_v37 = vpack.c.bf16 %v786_v3, %v785_v29  ;;  %v1193_v4 = vrot.slane %v5609_v14, 4  ;;  %v937_v39 = vrot.slane %v6750_v26, 4  ;;  %v6751_v45 = vshrl.u32 %v5547_v62, 16  ;;  %v791_v29 = vld [vmem:[#allocation2 + $0xe0] sm:$0xff] }
 0x10a   : > { %v571_v46 = vadd.f32 %v4506_v36, %v5463_v34  ;;  %v562_v47 = vpop.f32.mrb[17].mxu0  ;;  %v1197_v40 = vrot.slane %v5616_v30, 4  ;;  %v6752_v50 = vshll.u32 %v5547_v62, 16  ;;  %v6753_v53 = vshrl.u32 %v5561_v7, 16 }
 0x10b   : > { %v563_v55 = vadd.f32 %v5463_v34, %v562_v47  ;;  %v4507_v59 = vpop.f32.mrb[18].mxu0  ;;  %v1194_v60 = vrot.slane %v5623_v37, 4  ;;  %v938_v63 = vor.u32 %v937_v39, %v934_v35  ;;  %v5637_v1 = vrot.slane %v6751_v45, 3  ;;  %v798_v45 = vld [vmem:[#allocation2 + $0x118] sm:$0xff] }
 0x10c   : > { %v643_v3 = vmax.f32 %v571_v46, 0.0  ;;  %v574_v57 = vadd.f32 %v4507_v59, %v5463_v34  ;;  %v565_v9 = vpop.f32.mrb[19].mxu0  ;;  %v5641_v17 = vsel %vm1177_vm2, %v1196_v32, %v1197_v40  ;;  %v5645_v36 = vrot.slane %v6752_v50, 4  ;;  %v794_v59 = vld [vmem:[#allocation2 + $0xf8] sm:$0xff] }
 0x10d   : > { %6855 = vst [vmem:[#allocation4_spill] sm:$0xff] %v5641_v17  ;;  %v641_v47 = vmax.f32 %v563_v55, 0.0  ;;  %v566_v26 = vadd.f32 %v5463_v34, %v565_v9  ;;  %v5649_v35 = vsel %vm1177_vm2, %v1193_v4, %v1194_v60  ;;  %v796_v39 = vld [vmem:[#allocation2 + $0x108] sm:$0xff]  ;;  %v5652_v46 = vsel %vm871_vm3, %v930_v33, %v938_v63 }
 0x10e   : > { %749 = vst.msk [vmem:[#allocation2 + $0x148] sm:$0xff] %vm657_vm1, %v643_v3  ;;  %v644_v32 = vmax.f32 %v574_v57, 0.0  ;;  %4531 = vmatmul.mubr.msk.bf16.gmra.mrb[40].mxu0 %vm657_vm1, %v5649_v35  ;;  %v792_v40 = vld [vmem:[#allocation2 + $0xe8] sm:$0xff]  ;;  %v5657_v50 = vpack.c.bf16 %v796_v39, %v795_v61  ;;  %v5663_v4 = vrot.slane %v6753_v53, 3  ;;  %v6773_v3 = vshll.u32 %v5561_v7, 16 }
 0x10f   : > { %747 = vst.msk [vmem:[#allocation2 + $0x128] sm:$0xff] %vm657_vm1, %v641_v47  ;;  %v642_v33 = vmax.f32 %v566_v26, 0.0  ;;  %4534 = vmatprep.mubr.msk.bf16.mxu0 %vm657_vm1, %v5641_v17  ;;  %v5668_v60 = vpack.c.bf16 %v792_v40, %v791_v29  ;;  %v797_v63 = vld [vmem:[#allocation2 + $0x110] sm:$0xff] }
 0x110   : > { %750 = vst.msk [vmem:[#allocation2 + $0x150] sm:$0xff] %vm657_vm1, %v644_v32  ;;  %v793_v57 = vld [vmem:[#allocation2 + $0xf0] sm:$0xff]  ;;  %v5673_v9 = vpack.c.bf16 %v798_v45, %v797_v63  ;;  %v1202_v39 = vrot.slane %v5657_v50, 4  ;;  %v6761_v47 = vshrl.u32 %v5657_v50, 16  ;;  %v6763_v26 = vshll.u32 %v5657_v50, 16 }
 0x111   : > { %748 = vst.msk [vmem:[#allocation2 + $0x130] sm:$0xff] %vm657_vm1, %v642_v33  ;;  %v4510_v29 = vpop.f32.mrb[20].mxu0  ;;  %v5679_v40 = vpack.c.bf16 %v794_v59, %v793_v57  ;;  %v1199_v53 = vrot.slane %v5668_v60, 4  ;;  %v6767_v8 = vshrl.u32 %v5668_v60, 16  ;;  %v6770_v32 = vshll.u32 %v5668_v60, 16 }
 0x112   : > { %v587_v45 = vadd.f32 %v4510_v29, %v5463_v34  ;;  %v578_v63 = vpop.f32.mrb[21].mxu0  ;;  %v1203_v44 = vrot.slane %v5673_v9, 4  ;;  %v5688_v22 = vrot.slane %v6761_v47, 3  ;;  %v5692_v33 = vrot.slane %v6763_v26, 4 }
 0x113   : > { %v579_v59 = vadd.f32 %v5463_v34, %v578_v63  ;;  %v4511_v57 = vpop.f32.mrb[22].mxu0  ;;  %v1200_v12 = vrot.slane %v5679_v40, 4  ;;  %v994_v5 = vrot.slane %v6767_v8, 3  ;;  %v997_v29 = vrot.slane %v6770_v32, 4  ;;  %v806_v32 = vld [vmem:[#allocation2 + $0x158] sm:$0xff] }
 0x114   : > { %v647_v21 = vmax.f32 %v587_v45, 0.0  ;;  %v590_v20 = vadd.f32 %v4511_v57, %v5463_v34  ;;  %v581_v47 = vpop.f32.mrb[23].mxu0  ;;  %v5702_v43 = vsel %vm1177_vm2, %v1202_v39, %v1203_v44  ;;  %v6771_v26 = vshrl.u32 %v5679_v40, 16 }
 0x115   : > { %6856 = vst [vmem:[#allocation5_spill] sm:$0xff] %v5702_v43  ;;  %v645_v63 = vmax.f32 %v579_v59, 0.0  ;;  %v582_v41 = vadd.f32 %v5463_v34, %v581_v47  ;;  %v5707_v38 = vsel %vm1177_vm2, %v1199_v53, %v1200_v12  ;;  %v998_v8 = vor.u32 %v997_v29, %v994_v5  ;;  %v804_v51 = vld [vmem:[#allocation2 + $0x148] sm:$0xff]  ;;  %v802_v53 = vld [vmem:[#allocation2 + $0x138] sm:$0xff] }
 0x116   : > { %6857 = vst [vmem:[#allocation6_spill] sm:$0xff] %v5707_v38  ;;  %753 = vst.msk [vmem:[#allocation2 + $0x188] sm:$0xff] %vm657_vm1, %v647_v21  ;;  %v648_v45 = vmax.f32 %v590_v20, 0.0  ;;  %4535 = vmatmul.mubr.msk.bf16.gmra.mrb[44].mxu0 %vm657_vm1, %v5707_v38  ;;  %v1002_v44 = vrot.slane %v6771_v26, 3  ;;  %v6772_v39 = vshll.u32 %v5679_v40, 16  ;;  %v1015_v47 = vor.u32 %v5692_v33, %v5688_v22  ;;  %v800_v12 = vld [vmem:[#allocation2 + $0x128] sm:$0xff] }
 0x117   : > { %751 = vst.msk [vmem:[#allocation2 + $0x168] sm:$0xff] %vm657_vm1, %v645_v63  ;;  %v646_v5 = vmax.f32 %v582_v41, 0.0  ;;  %4538 = vmatprep.mubr.msk.bf16.mxu0 %vm657_vm1, %v5702_v43  ;;  %v6776_v20 = vshrl.u32 %v5673_v9, 16  ;;  %v6777_v21 = vshll.u32 %v5673_v9, 16  ;;  %v5722_v59 = vpack.c.bf16 %v800_v12, %v799_v42  ;;  %v805_v57 = vld [vmem:[#allocation2 + $0x150] sm:$0xff]  ;;  %v811_v38 = vld [vmem:[#allocation2 + $0x180] sm:$0xff] }
 0x118   : > { %754 = vst.msk [vmem:[#allocation2 + $0x190] sm:$0xff] %vm657_vm1, %v648_v45  ;;  %v1005_v22 = vrot.slane %v6772_v39, 4  ;;  %v801_v33 = vld [vmem:[#allocation2 + $0x130] sm:$0xff]  ;;  %v5727_v29 = vpack.c.bf16 %v804_v51, %v803_v0  ;;  %v5729_v63 = vpack.c.bf16 %v806_v32, %v805_v57  ;;  %v5733_v41 = vrot.slane %v6773_v3, 4 }
 0x119   : > { %752 = vst.msk [vmem:[#allocation2 + $0x170] sm:$0xff] %vm657_vm1, %v646_v5  ;;  %v4514_v26 = vpop.f32.mrb[24].mxu0  ;;  %v1019_v42 = vrot.slane %v6776_v20, 3  ;;  %v1022_v45 = vrot.slane %v6777_v21, 4  ;;  %v5740_v12 = vpack.c.bf16 %v802_v53, %v801_v33  ;;  %v1205_v51 = vrot.slane %v5722_v59, 4 }
 0x11a   : > { %6858 = vst [vmem:[#allocation7_spill] sm:$0xff] %v5727_v29  ;;  %6859 = vst [vmem:[#allocation8_spill] sm:$0xff] %v5729_v63  ;;  %v603_v0 = vadd.f32 %v4514_v26, %v5463_v34  ;;  %v594_v32 = vpop.f32.mrb[25].mxu0  ;;  %v1006_v57 = vor.u32 %v1005_v22, %v1002_v44  ;;  %v1208_v39 = vrot.slane %v5727_v29, 4  ;;  %v1209_v3 = vrot.slane %v5729_v63, 4 }
 0x11b   : > { %v595_v5 = vadd.f32 %v5463_v34, %v594_v32  ;;  %v4515_v28 = vpop.f32.mrb[26].mxu0  ;;  %v1023_v27 = vor.u32 %v1022_v45, %v1019_v42  ;;  %v1206_v20 = vrot.slane %v5740_v12, 4  ;;  %v6778_v21 = vshrl.u32 %v5722_v59, 16 }
 0x11c   : > { %v651_v53 = vmax.f32 %v603_v0, 0.0  ;;  %v5750_v33 = vsel %vm871_vm3, %v998_v8, %v1006_v57  ;;  %v606_v26 = vadd.f32 %v4515_v28, %v5463_v34  ;;  %v597_v61 = vpop.f32.mrb[27].mxu0  ;;  %v5754_v44 = vsel %vm1177_vm2, %v1208_v39, %v1209_v3  ;;  %v5768_v28 = vld [vmem:[%s6745_s3 + $0x14] sm:$0xf]  ;;  %v807_v39 = vld [vmem:[#allocation2 + $0x160] sm:$0xff] }
 0x11d   : > { %6860 = vst [vmem:[#allocation9_spill] sm:$0xff] %v5750_v33  ;;  %6861 = vst [vmem:[#allocation10_spill] sm:$0xff] %v5754_v44  ;;  %v649_v22 = vmax.f32 %v595_v5, 0.0  ;;  %4636 = vmatprep.mubr.msk.bf16.mxu1 %vm657_vm1, %v5750_v33  ;;  %v5759_v42 = vsel %vm871_vm3, %v1015_v47, %v1023_v27  ;;  %v598_v45 = vadd.f32 %v5463_v34, %v597_v61  ;;  %v1028_v27 = vrot.slane %v6778_v21, 3 }
 0x11e   : > { %6862 = vst [vmem:[#allocation11_spill] sm:$0xff] %v5759_v42  ;;  %v5763_v0 = vsel %vm1177_vm2, %v1205_v51, %v1206_v20  ;;  %757 = vst.msk [vmem:[#allocation2 + $0x1c8] sm:$0xff] %vm657_vm1, %v651_v53  ;;  %v652_v8 = vmax.f32 %v606_v26, 0.0  ;;  %4637 = vmatmul.mubr.msk.bf16.vlgmr.msra.gmra.mrb[0].mxu1 %vm657_vm1, %v5759_v42  ;;  %v6779_v3 = vshll.u32 %v5722_v59, 16  ;;  %v6780_v61 = vshrl.u32 %v5740_v12, 16  ;;  %v808_v47 = vld [vmem:[#allocation2 + $0x168] sm:$0xff] }
 0x11f   : > { %6863 = vst [vmem:[#allocation12_spill] sm:$0xff] %v5763_v0  ;;  %4539 = vmatmul.mubr.msk.bf16.gmra.mrb[48].mxu0 %vm657_vm1, %v5763_v0  ;;  %755 = vst.msk [vmem:[#allocation2 + $0x1a8] sm:$0xff] %vm657_vm1, %v649_v22  ;;  %4657 = vmatpush3.bf16.msra.mxu1 %v5493_v11  ;;  %v650_v20 = vmax.f32 %v598_v45, 0.0  ;;  %v6790_v51 = vshll.u32 %v5740_v12, 16  ;;  %v6793_v32 = vshrl.u32 %v5727_v29, 16  ;;  %v6798_v57 = vshll.u32 %v5727_v29, 16 }
 0x120   : > { %4542 = vmatprep.mubr.msk.bf16.mxu0 %vm657_vm1, %v5754_v44  ;;  %758 = vst.msk [vmem:[#allocation2 + $0x1d0] sm:$0xff] %vm657_vm1, %v652_v8  ;;  %v1031_v5 = vrot.slane %v6779_v3, 4  ;;  %v1036_v53 = vrot.slane %v6780_v61, 3  ;;  %v809_v22 = vld [vmem:[#allocation2 + $0x170] sm:$0xff]  ;;  %v810_v45 = vld [vmem:[#allocation2 + $0x178] sm:$0xff]  ;;  %5128 = vmatprep.subr.msk.bf16.mxu1 %vm1177_vm2, %v5768_v28  ;;  %v5802_v55 = vpack.c.bf16 %v808_v47, %v807_v39  ;;  %v6864_v44 = vshrl.u32 %v5729_v63, 16 }
 0x121   : > { %756 = vst.msk [vmem:[#allocation2 + $0x1b0] sm:$0xff] %vm657_vm1, %v650_v20  ;;  %v4518_v21 = vpop.f32.mrb[28].mxu0  ;;  %v1039_v8 = vrot.slane %v6790_v51, 4  ;;  %v1045_v3 = vrot.slane %v6793_v32, 3  ;;  %v1048_v61 = vrot.slane %v6798_v57, 4  ;;  %v6865_v20 = vshll.u32 %v5729_v63, 16 }
 0x122   : > { %v619_v26 = vadd.f32 %v4518_v21, %v5463_v34  ;;  %v610_v11 = vpop.f32.mrb[29].mxu0  ;;  %v1032_v31 = vor.u32 %v1031_v5, %v1028_v27  ;;  %v1053_v0 = vrot.slane %v6864_v44, 3  ;;  %v5810_v33 = vpack.c.bf16 %v810_v45, %v809_v22  ;;  %v812_v39 = vld [vmem:[#allocation2 + $0x188] sm:$0xff]  ;;  %v813_v47 = vld [vmem:[#allocation2 + $0x190] sm:$0xff]  ;;  %v814_v57 = vld [vmem:[#allocation2 + $0x198] sm:$0xff] }
 0x123   : > { %v1056_v43 = vrot.slane %v6865_v20, 4  ;;  %v611_v51 = vadd.f32 %v5463_v34, %v610_v11  ;;  %v1040_v42 = vor.u32 %v1039_v8, %v1036_v53  ;;  %v4519_v32 = vpop.f32.mrb[30].mxu0  ;;  %v1049_v17 = vor.u32 %v1048_v61, %v1045_v3  ;;  %v818_v11 = vld [vmem:[#allocation2 + $0x1b8] sm:$0xff] }
 0x124   : > { %v655_v21 = vmax.f32 %v619_v26, 0.0  ;;  %v622_v27 = vadd.f32 %v4519_v32, %v5463_v34  ;;  %v613_v29 = vpop.f32.mrb[31].mxu0  ;;  %v1211_v44 = vrot.slane %v5802_v55, 4  ;;  %v1212_v3 = vrot.slane %v5810_v33, 4  ;;  %v819_v26 = vld [vmem:[#allocation2 + $0x1c0] sm:$0xff] }
 0x125   : > { %v1057_v5 = vor.u32 %v1056_v43, %v1053_v0  ;;  %v653_v63 = vmax.f32 %v611_v51, 0.0  ;;  %v5815_v20 = vsel %vm871_vm3, %v1032_v31, %v1040_v42  ;;  %v614_v53 = vadd.f32 %v5463_v34, %v613_v29 }
 0x126   : > { %6866 = vst [vmem:[#allocation13_spill] sm:$0xff] %v5815_v20  ;;  %761 = vst.msk [vmem:[#allocation2 + $0x208] sm:$0xff] %vm657_vm1, %v655_v21  ;;  %4640 = vmatprep.mubr.msk.bf16.mxu1 %vm657_vm1, %v5815_v20  ;;  %v656_v61 = vmax.f32 %v622_v27, 0.0  ;;  %v5825_v43 = vpack.c.bf16 %v812_v39, %v811_v38  ;;  %v5827_v0 = vpack.c.bf16 %v814_v57, %v813_v47  ;;  %v6804_v29 = vshrl.u32 %v5802_v55, 16  ;;  %v815_v57 = vld [vmem:[#allocation2 + $0x1a0] sm:$0xff]  ;;  %v816_v47 = vld [vmem:[#allocation2 + $0x1a8] sm:$0xff] }
 0x127   : > { %v5823_v32 = vsel %vm871_vm3, %v1049_v17, %v1057_v5  ;;  %759 = vst.msk [vmem:[#allocation2 + $0x1e8] sm:$0xff] %vm657_vm1, %v653_v63  ;;  %v654_v31 = vmax.f32 %v614_v53, 0.0  ;;  %v5833_v34 = vsel %vm1177_vm2, %v1211_v44, %v1212_v3  ;;  %v6803_v42 = vshll.u32 %v5802_v55, 16  ;;  %v820_v3 = vld [vmem:[#allocation2 + $0x1c8] sm:$0xff] }
 0x128   : > { %6867 = vst [vmem:[#allocation14_spill] sm:$0xff] %v5823_v32  ;;  %4641 = vmatmul.mubr.msk.bf16.gmra.mrb[4].mxu1 %vm657_vm1, %v5823_v32  ;;  %6868 = vst [vmem:[#allocation15_spill] sm:$0xff] %v5833_v34  ;;  %4543 = vmatmul.mubr.msk.bf16.gmra.mrb[52].mxu0 %vm657_vm1, %v5833_v34  ;;  %v1214_v38 = vrot.slane %v5825_v43, 4  ;;  %v1215_v17 = vrot.slane %v5827_v0, 4  ;;  %v6805_v63 = vshrl.u32 %v5810_v33, 16  ;;  %v6806_v51 = vshll.u32 %v5810_v33, 16 }
 0x129   : > { %762 = vst.msk [vmem:[#allocation2 + $0x210] sm:$0xff] %vm657_vm1, %v656_v61  ;;  %760 = vst.msk [vmem:[#allocation2 + $0x1f0] sm:$0xff] %vm657_vm1, %v654_v31  ;;  %v1062_v22 = vrot.slane %v6804_v29, 3  ;;  %v1065_v45 = vrot.slane %v6803_v42, 4  ;;  %v6813_v8 = vshrl.u32 %v5825_v43, 16  ;;  %v6814_v39 = vshll.u32 %v5825_v43, 16 }
 0x12a   : > { %v817_v21 = vld [vmem:[#allocation2 + $0x1b0] sm:$0xff]  ;;  %v5852_v27 = vsel %vm1177_vm2, %v1214_v38, %v1215_v17  ;;  %v1070_v5 = vrot.slane %v6805_v63, 3  ;;  %v1073_v44 = vrot.slane %v6806_v51, 4  ;;  %v6818_v53 = vshrl.u32 %v5827_v0, 16  ;;  %v822_v31 = vld [vmem:[#allocation2 + $0x1d8] sm:$0xff] }
 0x12b   : > { %6869 = vst [vmem:[#allocation16_spill] sm:$0xff] %v5852_v27  ;;  %v821_v61 = vld [vmem:[#allocation2 + $0x1d0] sm:$0xff]  ;;  %4546 = vmatprep.mubr.msk.bf16.mxu0 %vm657_vm1, %v5852_v27  ;;  %v1066_v42 = vor.u32 %v1065_v45, %v1062_v22  ;;  %v1079_v29 = vrot.slane %v6813_v8, 3  ;;  %v1082_v38 = vrot.slane %v6814_v39, 4  ;;  %v6817_v17 = vshll.u32 %v5827_v0, 16 }
 0x12c   : > { %v1074_v63 = vor.u32 %v1073_v44, %v1070_v5  ;;  %v1087_v51 = vrot.slane %v6818_v53, 3  ;;  %v5868_v34 = vpack.c.bf16 %v816_v47, %v815_v57  ;;  %v5870_v32 = vpack.c.bf16 %v818_v11, %v817_v21 }
 0x12d   : > { %v1083_v20 = vor.u32 %v1082_v38, %v1079_v29  ;;  %v1090_v22 = vrot.slane %v6817_v17, 4  ;;  %v5874_v45 = vpack.c.bf16 %v820_v3, %v819_v26  ;;  %v5876_v8 = vpack.c.bf16 %v822_v31, %v821_v61  ;;  %v823_v61 = vld [vmem:[#allocation2 + $0x1e0] sm:$0xff] }
 0x12e   : > { %v5879_v39 = vsel %vm871_vm3, %v1066_v42, %v1074_v63  ;;  %v1217_v5 = vrot.slane %v5868_v34, 4  ;;  %v1218_v44 = vrot.slane %v5870_v32, 4  ;;  %v6815_v57 = vshrl.u32 %v5868_v34, 16  ;;  %v824_v31 = vld [vmem:[#allocation2 + $0x1e8] sm:$0xff] }
 0x12f   : > { %6870 = vst [vmem:[#allocation17_spill] sm:$0xff] %v5874_v45  ;;  %6871 = vst [vmem:[#allocation18_spill] sm:$0xff] %v5876_v8  ;;  %4644 = vmatprep.mubr.msk.bf16.mxu1 %vm657_vm1, %v5879_v39  ;;  %v1091_v29 = vor.u32 %v1090_v22, %v1087_v51  ;;  %v1220_v11 = vrot.slane %v5874_v45, 4  ;;  %v1221_v26 = vrot.slane %v5876_v8, 4  ;;  %v6816_v47 = vshll.u32 %v5868_v34, 16 }
 0x130   : > { %6872 = vst [vmem:[#allocation19_spill] sm:$0xff] %v5879_v39  ;;  %v5890_v21 = vsel %vm1177_vm2, %v1217_v5, %v1218_v44  ;;  %v1096_v42 = vrot.slane %v6815_v57, 3  ;;  %v6825_v63 = vshrl.u32 %v5870_v32, 16  ;;  %v6826_v3 = vshll.u32 %v5870_v32, 16  ;;  %v825_v44 = vld [vmem:[#allocation2 + $0x1f0] sm:$0xff]  ;;  %v826_v57 = vld [vmem:[#allocation2 + $0x1f8] sm:$0xff] }
 0x131   : > { %6873 = vst [vmem:[#allocation20_spill] sm:$0xff] %v5890_v21  ;;  %v5897_v51 = vsel %vm871_vm3, %v1083_v20, %v1091_v29  ;;  %4547 = vmatmul.mubr.msk.bf16.gmra.mrb[56].mxu0 %vm657_vm1, %v5890_v21  ;;  %v5902_v38 = vsel %vm1177_vm2, %v1220_v11, %v1221_v26  ;;  %v1099_v22 = vrot.slane %v6816_v47, 4  ;;  %v6831_v5 = vshrl.u32 %v5874_v45, 16  ;;  %v830_v39 = vld [vmem:[#allocation2 + $0x218] sm:$0xff] }
 0x132   : > { %6874 = vst [vmem:[#allocation21_spill] sm:$0xff] %v5897_v51  ;;  %6875 = vst [vmem:[#allocation22_spill] sm:$0xff] %v5902_v38  ;;  %4645 = vmatmul.mubr.msk.bf16.gmra.mrb[8].mxu1 %vm657_vm1, %v5897_v51  ;;  %4550 = vmatprep.mubr.msk.bf16.mxu0 %vm657_vm1, %v5902_v38  ;;  %v1104_v20 = vrot.slane %v6825_v63, 3  ;;  %v1107_v29 = vrot.slane %v6826_v3, 4  ;;  %v6832_v11 = vshll.u32 %v5874_v45, 16  ;;  %v6834_v26 = vshrl.u32 %v5876_v8, 16 }
 0x133   : > { %v1100_v47 = vor.u32 %v1099_v22, %v1096_v42  ;;  %v1113_v17 = vrot.slane %v6831_v5, 3  ;;  %v6833_v53 = vshll.u32 %v5876_v8, 16  ;;  %v5920_v21 = vpack.c.bf16 %v824_v31, %v823_v61  ;;  %v827_v51 = vld [vmem:[#allocation2 + $0x200] sm:$0xff]  ;;  %v828_v31 = vld [vmem:[#allocation2 + $0x208] sm:$0xff] }
 0x134   : > { %v1108_v27 = vor.u32 %v1107_v29, %v1104_v20  ;;  %v1116_v38 = vrot.slane %v6832_v11, 4  ;;  %v1121_v63 = vrot.slane %v6834_v26, 3  ;;  %v5926_v3 = vpack.c.bf16 %v826_v57, %v825_v44  ;;  %v829_v20 = vld [vmem:[#allocation2 + $0x210] sm:$0xff] }
 0x135   : > { %v1124_v42 = vrot.slane %v6833_v53, 4  ;;  %v1223_v22 = vrot.slane %v5920_v21, 4  ;;  %v6846_v5 = vshrl.u32 %v5920_v21, 16  ;;  %v6839_v61 = vshll.u32 %v5920_v21, 16 }
 0x136   : > { %v5934_v29 = vsel %vm871_vm3, %v1100_v47, %v1108_v27  ;;  %v1117_v11 = vor.u32 %v1116_v38, %v1113_v17  ;;  %v1224_v57 = vrot.slane %v5926_v3, 4  ;;  %v6845_v44 = vshrl.u32 %v5926_v3, 16 }
 0x137   : > { %4648 = vmatprep.mubr.msk.bf16.mxu1 %vm657_vm1, %v5934_v29  ;;  %v1125_v53 = vor.u32 %v1124_v42, %v1121_v63  ;;  %v1130_v26 = vrot.slane %v6846_v5, 3  ;;  %v1133_v8 = vrot.slane %v6839_v61, 4  ;;  %v6840_v45 = vshll.u32 %v5926_v3, 16 }
 0x138   : > { %v5946_v27 = vsel %vm1177_vm2, %v1223_v22, %v1224_v57  ;;  %v1138_v17 = vrot.slane %v6845_v44, 3  ;;  %v5950_v47 = vpack.c.bf16 %v828_v31, %v827_v51  ;;  %v5952_v38 = vpack.c.bf16 %v830_v39, %v829_v20 }
 0x139   : > { %v5955_v63 = vsel %vm871_vm3, %v1117_v11, %v1125_v53  ;;  %4551 = vmatmul.mubr.msk.bf16.gmra.mrb[60].mxu0 %vm657_vm1, %v5946_v27  ;;  %v1134_v42 = vor.u32 %v1133_v8, %v1130_v26  ;;  %v1141_v61 = vrot.slane %v6840_v45, 4  ;;  %v955_v22 = vor.u32 %v5733_v41, %v5663_v4 }
 0x13a   : > { %4649 = vmatmul.mubr.msk.bf16.gmra.mrb[12].mxu1 %vm657_vm1, %v5955_v63  ;;  %v6844_v51 = vshrl.u32 %v5950_v47, 16  ;;  %v6843_v39 = vshll.u32 %v5950_v47, 16  ;;  %v6841_v53 = vshrl.u32 %v5952_v38, 16  ;;  %v6842_v11 = vshll.u32 %v5952_v38, 16  ;;  %4556 = vmatprep.mubr.msk.bf16.mxu0 %vm657_vm1, %v5500_v16 }
 0x13b   : > { %v1142_v8 = vor.u32 %v1141_v61, %v1138_v17  ;;  %v6876_v26 = vor.u32 %v5645_v36, %v5637_v1  ;;  %v6877_v41 = vshrl.u32 %v5609_v14, 16  ;;  %v6853_v20 = vshll.u32 %v5609_v14, 16 }
 0x13c   : > { %v2015_v57 = vrot.slane %v6844_v51, 3  ;;  %v2018_v45 = vrot.slane %v6843_v39, 4  ;;  %v2023_v16 = vrot.slane %v6841_v53, 3  ;;  %v2026_v1 = vrot.slane %v6842_v11, 4 }
 0x13d   : > { %v5975_v4 = vsel %vm871_vm3, %v6876_v26, %v955_v22  ;;  %v960_v31 = vrot.slane %v6877_v41, 3  ;;  %v5989_v36 = vsel %vm871_vm3, %v1134_v42, %v1142_v8  ;;  %v963_v61 = vrot.slane %v6853_v20, 4 }
 0x13e   : > { %v6852_v17 = vshrl.u32 %v5623_v37, 16  ;;  %v6851_v22 = vshll.u32 %v5623_v37, 16  ;;  %4652 = vmatprep.mubr.msk.bf16.mxu1 %vm657_vm1, %v5989_v36  ;;  %v2019_v26 = vor.u32 %v2018_v45, %v2015_v57  ;;  %v2027_v41 = vor.u32 %v2026_v1, %v2023_v16 }
 0x13f   : > { %v6849_v53 = vshrl.u32 %v5601_v6, 16  ;;  %v6848_v11 = vshll.u32 %v5601_v6, 16  ;;  %v964_v39 = vor.u32 %v963_v61, %v960_v31  ;;  %v6847_v51 = vshrl.u32 %v5616_v30, 16 }
 0x140   : > { %v968_v42 = vrot.slane %v6852_v17, 3  ;;  %v971_v8 = vrot.slane %v6851_v22, 4  ;;  %v6005_v44 = vsel %vm871_vm3, %v2019_v26, %v2027_v41  ;;  %v6850_v16 = vshll.u32 %v5616_v30, 16 }
 0x141   : > { %v977_v45 = vrot.slane %v6849_v53, 3  ;;  %v980_v57 = vrot.slane %v6848_v11, 4  ;;  %4557 = vmatmul.mubr.msk.bf16.vlgmr.msra.gmra.mrb[32].mxu0 %vm657_vm1, %v5592_v52  ;;  %v985_v1 = vrot.slane %v6847_v51, 3  ;;  %v1817_v61 = vsel %vm1177_vm2, %v5542_v58, 0 }
 0x142   : > { %v972_v31 = vor.u32 %v971_v8, %v968_v42  ;;  %v2232_v26 = vrot.slane %v5950_v47, 4  ;;  %4653 = vmatmul.mubr.msk.bf16.gmra.mrb[16].mxu1 %vm657_vm1, %v6005_v44  ;;  %4560 = vmatprep.mubr.msk.bf16.mxu0 %vm657_vm1, %v5612_v19  ;;  %v988_v5 = vrot.slane %v6850_v16, 4  ;;  %v2233_v42 = vrot.slane %v5952_v38, 4 }
 0x143   : > { %v981_v41 = vor.u32 %v980_v57, %v977_v45  ;;  %v6878_v8 = vshrl.u32 %v5496_v13, 16  ;;  %4658 = vmatprep.mubr.msk.bf16.mxu1 %vm657_vm1, %v5537_v54  ;;  %4589 = vmatpush3.bf16.msra.mxu0 %v1817_v61  ;;  %v6879_v11 = vshll.u32 %v5496_v13, 16  ;;  %v6880_v45 = vshrl.u32 %v5509_v24, 16  ;;  %v5164_v13 = vld [vmem:[%s6745_s3 + $0xc] sm:$0xf] }
 0x144   : > { %v6031_v58 = vsel %vm871_vm3, %v964_v39, %v972_v31  ;;  %v6881_v16 = vshll.u32 %v5509_v24, 16  ;;  %v989_v17 = vor.u32 %v988_v5, %v985_v1  ;;  %v6040_v20 = vsel %vm1177_vm2, %v2232_v26, %v2233_v42  ;;  %5125 = vmatprep.subr.msk.bf16.mxu0 %vm1177_vm2, %v5164_v13 }
 0x145   : > { %v1661_v51 = vrot.slane %v6878_v8, 4  ;;  %v1662_v53 = vrot.slane %v6879_v11, 5  ;;  %v1664_v57 = vrot.slane %v6880_v45, 4  ;;  %v6882_v8 = vshrl.u32 %v5431_v23, 16 }
 0x146   : > { %v1665_v22 = vrot.slane %v6881_v16, 5  ;;  %v6883_v39 = vshll.u32 %v5431_v23, 16  ;;  %v6884_v24 = vshrl.u32 %v5436_v25, 16  ;;  %v6885_v16 = vshll.u32 %v5436_v25, 16 }
 0x147   : > { %v1654_v54 = vrot.slane %v6882_v8, 4  ;;  %v1663_v11 = vor.u32 %v1662_v53, %v1661_v51  ;;  %v6055_v26 = vsel %vm871_vm3, %v981_v41, %v989_v17  ;;  %v6886_v23 = vshrl.u32 %v5490_v10, 16 }
 0x148   : > { %v1655_v31 = vrot.slane %v6883_v39, 5  ;;  %v1666_v61 = vor.u32 %v1665_v22, %v1664_v57  ;;  %v1657_v5 = vrot.slane %v6884_v24, 4  ;;  %v1658_v1 = vrot.slane %v6885_v16, 5 }
 0x149   : > { %v1668_v45 = vrot.slane %v6886_v23, 4  ;;  %v6887_v8 = vshll.u32 %v5490_v10, 16  ;;  %v6888_v53 = vshrl.u32 %v5503_v18, 16  ;;  %v6889_v25 = vshll.u32 %v5503_v18, 16  ;;  %4561 = vmatmul.mubr.msk.bf16.gmra.mrb[36].mxu0 %vm657_vm1, %v5652_v46  ;;  %v6082_v18 = vld [vmem:[%s6745_s3 + $0x18] sm:$0xf] }
 0x14a   : > { %v1656_v42 = vor.u32 %v1655_v31, %v1654_v54  ;;  %v6062_v13 = vsel %vm1653_vm4, %v1663_v11, %v1666_v61  ;;  %v1659_v51 = vor.u32 %v1658_v1, %v1657_v5  ;;  %v2449_v17 = vsel %vm1177_vm2, %v5768_v28, 0  ;;  %4659 = vmatmul.mubr.msk.bf16.vlgmr.msra.gmra.mrb[20].mxu1 %vm657_vm1, %v5532_v49  ;;  %4564 = vmatprep.mubr.msk.bf16.mxu0 %vm657_vm1, %v5975_v4 }
 0x14b   : > { %v1669_v39 = vrot.slane %v6887_v8, 5  ;;  %v1671_v22 = vrot.slane %v6888_v53, 4  ;;  %v1672_v57 = vrot.slane %v6889_v25, 5  ;;  %v6890_v54 = vshrl.u32 %v5555_v2, 16  ;;  %4691 = vmatpush3.bf16.msra.mxu1 %v2449_v17  ;;  %4662 = vmatprep.mubr.msk.bf16.mxu1 %vm657_vm1, %v5596_v56 }
 0x14c   : > { %v6891_v10 = vshll.u32 %v5555_v2, 16  ;;  %v6077_v11 = vsel %vm1653_vm4, %v1656_v42, %v1659_v51  ;;  %v6892_v28 = vshrl.u32 %v5570_v15, 16  ;;  %v6893_v16 = vshll.u32 %v5570_v15, 16  ;;  %5129 = vmatprep.subr.msk.bf16.mxu1 %vm1177_vm2, %v6082_v18 }
 0x14d   : > { %v1670_v41 = vor.u32 %v1669_v39, %v1668_v45  ;;  %v1675_v31 = vrot.slane %v6890_v54, 4  ;;  %v1673_v61 = vor.u32 %v1672_v57, %v1671_v22  ;;  %v6894_v42 = vshrl.u32 %v5547_v62, 16 }
 0x14e   : > { %v1676_v24 = vrot.slane %v6891_v10, 5  ;;  %v1678_v5 = vrot.slane %v6892_v28, 4  ;;  %v1679_v1 = vrot.slane %v6893_v16, 5  ;;  %v6895_v45 = vshll.u32 %v5547_v62, 16 }
 0x14f   : > { %v1682_v23 = vrot.slane %v6894_v42, 4  ;;  %v6896_v39 = vshrl.u32 %v5561_v7, 16  ;;  %v6101_v15 = vsel %vm1653_vm4, %v1670_v41, %v1673_v61  ;;  %v6897_v22 = vshll.u32 %v5561_v7, 16 }
 0x150   : > { %v1677_v2 = vor.u32 %v1676_v24, %v1675_v31  ;;  %v1683_v8 = vrot.slane %v6895_v45, 5  ;;  %v1680_v53 = vor.u32 %v1679_v1, %v1678_v5  ;;  %v6898_v57 = vshrl.u32 %v5609_v14, 16 }
 0x151   : > { %v1685_v51 = vrot.slane %v6896_v39, 4  ;;  %v1686_v25 = vrot.slane %v6897_v22, 5  ;;  %v6899_v31 = vshll.u32 %v5609_v14, 16  ;;  %v6900_v10 = vshrl.u32 %v5623_v37, 16  ;;  %4565 = vmatmul.mubr.msk.bf16.gmra.mrb[40].mxu0 %vm657_vm1, %v6031_v58 }
 0x152   : > { %v1689_v54 = vrot.slane %v6898_v57, 4  ;;  %v1684_v62 = vor.u32 %v1683_v8, %v1682_v23  ;;  %v6901_v41 = vshll.u32 %v5623_v37, 16  ;;  %v6116_v28 = vsel %vm1653_vm4, %v1677_v2, %v1680_v53  ;;  %4663 = vmatmul.mubr.msk.bf16.gmra.mrb[24].mxu1 %vm657_vm1, %v5589_v48  ;;  %4568 = vmatprep.mubr.msk.bf16.mxu0 %vm657_vm1, %v6055_v26 }
 0x153   : > { %v1690_v17 = vrot.slane %v6899_v31, 5  ;;  %v1692_v24 = vrot.slane %v6900_v10, 4  ;;  %v1687_v7 = vor.u32 %v1686_v25, %v1685_v51  ;;  %v6902_v5 = vshrl.u32 %v5601_v6, 16  ;;  %4666 = vmatprep.mubr.msk.bf16.mxu1 %vm657_vm1, %v5649_v35 }
 0x154   : > { %v1693_v61 = vrot.slane %v6901_v41, 5  ;;  %v6903_v1 = vshll.u32 %v5601_v6, 16  ;;  %v6904_v14 = vshrl.u32 %v5616_v30, 16  ;;  %v6905_v39 = vshll.u32 %v5616_v30, 16 }
 0x155   : > { %v1696_v16 = vrot.slane %v6902_v5, 4  ;;  %v1691_v23 = vor.u32 %v1690_v17, %v1689_v54  ;;  %v6127_v37 = vsel %vm1653_vm4, %v1684_v62, %v1687_v7  ;;  %v6906_v51 = vshrl.u32 %v5668_v60, 16 }
 0x156   : > { %v1697_v42 = vrot.slane %v6903_v1, 5  ;;  %v1694_v45 = vor.u32 %v1693_v61, %v1692_v24  ;;  %v1699_v8 = vrot.slane %v6904_v14, 4  ;;  %v1700_v22 = vrot.slane %v6905_v39, 5 }
 0x157   : > { %v1703_v53 = vrot.slane %v6906_v51, 4  ;;  %v6907_v25 = vshll.u32 %v5668_v60, 16  ;;  %v6908_v31 = vshrl.u32 %v5679_v40, 16  ;;  %v6909_v30 = vshll.u32 %v5679_v40, 16 }
 0x158   : > { %v1698_v2 = vor.u32 %v1697_v42, %v1696_v16  ;;  %v6134_v6 = vsel %vm1653_vm4, %v1691_v23, %v1694_v45  ;;  %v1701_v54 = vor.u32 %v1700_v22, %v1699_v8  ;;  %v6910_v24 = vshrl.u32 %v5657_v50, 16 }
 0x159   : > { %v1704_v57 = vrot.slane %v6907_v25, 5  ;;  %v1706_v17 = vrot.slane %v6908_v31, 4  ;;  %v1707_v10 = vrot.slane %v6909_v30, 5  ;;  %v6911_v60 = vshll.u32 %v5657_v50, 16  ;;  %v6918_v25 = vld [vmem:[#allocation7_spill] sm:$0xff] }
 0x15a   : > { %v1710_v41 = vrot.slane %v6910_v24, 4  ;;  %v6912_v7 = vshrl.u32 %v5673_v9, 16  ;;  %v6153_v40 = vsel %vm1653_vm4, %v1698_v2, %v1701_v54  ;;  %v6913_v1 = vshll.u32 %v5673_v9, 16 }
 0x15b   : > { %v1705_v62 = vor.u32 %v1704_v57, %v1703_v53  ;;  %v1711_v61 = vrot.slane %v6911_v60, 5  ;;  %v1708_v16 = vor.u32 %v1707_v10, %v1706_v17  ;;  %v6914_v23 = vshrl.u32 %v5722_v59, 16 }
 0x15c   : > { %v1713_v5 = vrot.slane %v6912_v7, 4  ;;  %v1714_v42 = vrot.slane %v6913_v1, 5  ;;  %v6915_v14 = vshll.u32 %v5722_v59, 16  ;;  %v6916_v39 = vshrl.u32 %v5740_v12, 16  ;;  %v6921_v59 = vld [vmem:[#allocation8_spill] sm:$0xff] }
 0x15d   : > { %v1717_v50 = vrot.slane %v6914_v23, 4  ;;  %v1712_v45 = vor.u32 %v1711_v61, %v1710_v41  ;;  %v6917_v2 = vshll.u32 %v5740_v12, 16  ;;  %v6168_v53 = vsel %vm1653_vm4, %v1705_v62, %v1708_v16 }
 0x15e   : > { %v1718_v8 = vrot.slane %v6915_v14, 5  ;;  %v1720_v22 = vrot.slane %v6916_v39, 4  ;;  %v1715_v9 = vor.u32 %v1714_v42, %v1713_v5  ;;  %v6919_v57 = vshrl.u32 %v6918_v25, 16 }
 0x15f   : > { %v1721_v51 = vrot.slane %v6917_v2, 5  ;;  %v6920_v31 = vshll.u32 %v6918_v25, 16  ;;  %v6922_v24 = vshrl.u32 %v6921_v59, 16  ;;  %v6923_v60 = vshll.u32 %v6921_v59, 16  ;;  %v6934_v59 = vld [vmem:[#allocation4_spill] sm:$0xff] }
 0x160   : > { %v1724_v54 = vrot.slane %v6919_v57, 4  ;;  %v1719_v30 = vor.u32 %v1718_v8, %v1717_v50  ;;  %v6179_v12 = vsel %vm1653_vm4, %v1712_v45, %v1715_v9  ;;  %v6924_v7 = vshrl.u32 %v5802_v55, 16  ;;  %v6931_v57 = vld [vmem:[#allocation9_spill] sm:$0xff]  ;;  %4667 = vmatmul.mubr.msk.bf16.gmra.mrb[28].mxu1 %vm657_vm1, %v6934_v59 }
 0x161   : > { %v1725_v17 = vrot.slane %v6920_v31, 5  ;;  %v1722_v10 = vor.u32 %v1721_v51, %v1720_v22  ;;  %v1727_v41 = vrot.slane %v6922_v24, 4  ;;  %v1728_v61 = vrot.slane %v6923_v60, 5  ;;  %4569 = vmatmul.mubr.msk.bf16.gmra.mrb[44].mxu0 %vm657_vm1, %v6931_v57 }
 0x162   : > { %v1731_v5 = vrot.slane %v6924_v7, 4  ;;  %v6925_v16 = vshll.u32 %v5802_v55, 16  ;;  %v6926_v50 = vshrl.u32 %v5810_v33, 16  ;;  %v6927_v8 = vshll.u32 %v5810_v33, 16 }
 0x163   : > { %v1726_v62 = vor.u32 %v1725_v17, %v1724_v54  ;;  %v6186_v42 = vsel %vm1653_vm4, %v1719_v30, %v1722_v10  ;;  %v1729_v23 = vor.u32 %v1728_v61, %v1727_v41  ;;  %v6928_v45 = vshrl.u32 %v5825_v43, 16 }
 0x164   : > { %v1732_v1 = vrot.slane %v6925_v16, 5  ;;  %v1734_v14 = vrot.slane %v6926_v50, 4  ;;  %v1735_v39 = vrot.slane %v6927_v8, 5  ;;  %v6929_v51 = vshll.u32 %v5825_v43, 16  ;;  %v6935_v43 = vld [vmem:[#allocation11_spill] sm:$0xff] }
 0x165   : > { %v1738_v2 = vrot.slane %v6928_v45, 4  ;;  %v6930_v55 = vshrl.u32 %v5827_v0, 16  ;;  %v6201_v54 = vsel %vm1653_vm4, %v1726_v62, %v1729_v23  ;;  %v6932_v33 = vshll.u32 %v5827_v0, 16  ;;  %4572 = vmatprep.mubr.msk.bf16.mxu0 %vm657_vm1, %v6935_v43  ;;  %v6940_v23 = vld [vmem:[#allocation17_spill] sm:$0xff] }
 0x166   : > { %v1733_v22 = vor.u32 %v1732_v1, %v1731_v5  ;;  %v1739_v9 = vrot.slane %v6929_v51, 5  ;;  %v1736_v31 = vor.u32 %v1735_v39, %v1734_v14  ;;  %v6933_v30 = vshrl.u32 %v5868_v34, 16  ;;  %v6939_v5 = vld [vmem:[#allocation6_spill] sm:$0xff] }
 0x167   : > { %v1741_v25 = vrot.slane %v6930_v55, 4  ;;  %v1742_v17 = vrot.slane %v6932_v33, 5  ;;  %v6936_v41 = vshll.u32 %v5868_v34, 16  ;;  %v6937_v61 = vshrl.u32 %v5870_v32, 16  ;;  %4670 = vmatprep.mubr.msk.bf16.mxu1 %vm657_vm1, %v6939_v5 }
 0x168   : > { %v1745_v10 = vrot.slane %v6933_v30, 4  ;;  %v1740_v24 = vor.u32 %v1739_v9, %v1738_v2  ;;  %v6938_v7 = vshll.u32 %v5870_v32, 16  ;;  %v6220_v16 = vsel %vm1653_vm4, %v1733_v22, %v1736_v31  ;;  %v6943_v2 = vld [vmem:[#allocation18_spill] sm:$0xff] }
 0x169   : > { %v1746_v60 = vrot.slane %v6936_v41, 5  ;;  %v1748_v62 = vrot.slane %v6937_v61, 4  ;;  %v1743_v1 = vor.u32 %v1742_v17, %v1741_v25  ;;  %v6941_v50 = vshrl.u32 %v6940_v23, 16 }
 0x16a   : > { %v1749_v0 = vrot.slane %v6938_v7, 5  ;;  %v6942_v8 = vshll.u32 %v6940_v23, 16  ;;  %v6944_v51 = vshrl.u32 %v6943_v2, 16  ;;  %v6945_v32 = vshll.u32 %v6943_v2, 16  ;;  %v6954_v2 = vld [vmem:[#allocation13_spill] sm:$0xff] }
 0x16b   : > { %v1752_v14 = vrot.slane %v6941_v50, 4  ;;  %v1747_v39 = vor.u32 %v1746_v60, %v1745_v10  ;;  %v6231_v33 = vsel %vm1653_vm4, %v1740_v24, %v1743_v1  ;;  %v6946_v25 = vshrl.u32 %v5920_v21, 16  ;;  %4573 = vmatmul.mubr.msk.bf16.gmra.mrb[48].mxu0 %vm657_vm1, %v6954_v2 }
 0x16c   : > { %v1753_v34 = vrot.slane %v6942_v8, 5  ;;  %v1750_v45 = vor.u32 %v1749_v0, %v1748_v62  ;;  %v1755_v9 = vrot.slane %v6944_v51, 4  ;;  %v1756_v55 = vrot.slane %v6945_v32, 5  ;;  %v6955_v51 = vld [vmem:[#allocation5_spill] sm:$0xff] }
 0x16d   : > { %v1759_v31 = vrot.slane %v6946_v25, 4  ;;  %v6947_v17 = vshll.u32 %v5920_v21, 16  ;;  %v6948_v60 = vshrl.u32 %v5926_v3, 16  ;;  %v6949_v62 = vshll.u32 %v5926_v3, 16  ;;  %4671 = vmatmul.mubr.msk.bf16.gmra.mrb[0].mxu1 %vm657_vm1, %v6955_v51  ;;  %v6959_v25 = vld [vmem:[#allocation10_spill] sm:$0xff] }
 0x16e   : > { %v1754_v22 = vor.u32 %v1753_v34, %v1752_v14  ;;  %v6238_v41 = vsel %vm1653_vm4, %v1747_v39, %v1750_v45  ;;  %v1757_v10 = vor.u32 %v1756_v55, %v1755_v9  ;;  %v6950_v24 = vshrl.u32 %v5950_v47, 16  ;;  %v6956_v9 = vld [vmem:[#allocation14_spill] sm:$0xff]  ;;  %v6957_v55 = vld [vmem:[#allocation12_spill] sm:$0xff] }
 0x16f   : > { %v1760_v30 = vrot.slane %v6947_v17, 5  ;;  %v1762_v61 = vrot.slane %v6948_v60, 4  ;;  %v1763_v7 = vrot.slane %v6949_v62, 5  ;;  %v6951_v23 = vshll.u32 %v5950_v47, 16  ;;  %4576 = vmatprep.mubr.msk.bf16.mxu0 %vm657_vm1, %v6956_v9  ;;  %4674 = vmatprep.mubr.msk.bf16.mxu1 %vm657_vm1, %v6957_v55  ;;  %v6961_v17 = vld [vmem:[#allocation15_spill] sm:$0xff]  ;;  %v6964_v60 = vld [vmem:[#allocation22_spill] sm:$0xff] }
 0x170   : > { %v2436_v1 = vrot.slane %v6950_v24, 4  ;;  %v6952_v21 = vshrl.u32 %v5952_v38, 16  ;;  %v6251_v8 = vsel %vm1653_vm4, %v1754_v22, %v1757_v10  ;;  %v6953_v39 = vshll.u32 %v5952_v38, 16  ;;  %v6958_v22 = vld [vmem:[#allocation19_spill] sm:$0xff]  ;;  %v6963_v10 = vld [vmem:[#allocation20_spill] sm:$0xff] }
 0x171   : > { %v1761_v0 = vor.u32 %v1760_v30, %v1759_v31  ;;  %v2437_v50 = vrot.slane %v6951_v23, 5  ;;  %v1764_v34 = vor.u32 %v1763_v7, %v1762_v61  ;;  %v6960_v31 = vld [vmem:[#allocation21_spill] sm:$0xff]  ;;  %v6962_v30 = vld [vmem:[#allocation16_spill] sm:$0xff]  ;;  %v6965_v61 = vld [vmem:[#allocation3_spill] sm:$0xff] }
 0x172   : > { %v2439_v14 = vrot.slane %v6952_v21, 4  ;;  %v2440_v45 = vrot.slane %v6953_v39, 5  ;;  %v4076_v62 = vld [vmem:[%s6745_s3 + $0x1c] sm:$0xf]  ;;  %v833_v7 = vld [vmem:[#allocation2 + $0x230] sm:$0xff] }
 0x173   : > { %v2438_v3 = vor.u32 %v2437_v50, %v2436_v1  ;;  %v6262_v47 = vsel %vm1653_vm4, %v1761_v0, %v1764_v34  ;;  %4577 = vmatmul.mubr.msk.bf16.gmra.mrb[52].mxu0 %vm657_vm1, %v6958_v22  ;;  %v834_v0 = vld [vmem:[#allocation2 + $0x238] sm:$0xff] }
 0x174   : > { %v2441_v32 = vor.u32 %v2440_v45, %v2439_v14  ;;  %4580 = vmatprep.mubr.msk.bf16.mxu0 %vm657_vm1, %v6960_v31  ;;  %v6360_v1 = vpack.c.bf16 %v834_v0, %v833_v7  ;;  %v4093_v14 = vld [vmem:[%s6745_s3 + $0x20] sm:$0xf] }
 0x175   : > { %4675 = vmatmul.mubr.msk.bf16.gmra.mrb[4].mxu1 %vm657_vm1, %v6959_v25  ;;  %v3081_v45 = vsel %vm1177_vm2, %v4093_v14, 0 }
 0x176   : > { %v6267_v38 = vsel %vm1653_vm4, %v2438_v3, %v2441_v32  ;;  %4678 = vmatprep.mubr.msk.bf16.mxu1 %vm657_vm1, %v6961_v17  ;;  %v2865_v50 = vrot.slane %v6360_v1, 4  ;;  %v5172_v3 = vld [vmem:[%s5253_s10 + $0x30] sm:$0xff]   ;;  %v5175_v32 = vld [vmem:[%s5253_s10 + $0x58] sm:$0xff]  }
 0x17b   : > { %4581 = vmatmul.mubr.msk.bf16.gmra.mrb[56].mxu0 %vm657_vm1, %v5934_v29 }
 0x17c   : > { %4584 = vmatprep.mubr.msk.bf16.mxu0 %vm657_vm1, %v5955_v63 }
 0x17d   : > { %4679 = vmatmul.mubr.msk.bf16.gmra.mrb[8].mxu1 %vm657_vm1, %v6962_v30 }
 0x17e   : > { %4682 = vmatprep.mubr.msk.bf16.mxu1 %vm657_vm1, %v6963_v10 }
 0x183   : > { %4585 = vmatmul.mubr.msk.bf16.gmra.mrb[60].mxu0 %vm657_vm1, %v5989_v36 }
 0x184   : > { %4590 = vmatprep.mubr.msk.bf16.mxu0 %vm657_vm1, %v6077_v11  ;;  %v2667_v11 = vsel %vm1177_vm2, %v6082_v18, 0  ;;  %v832_v18 = vld [vmem:[#allocation2 + $0x228] sm:$0xff] }
 0x185   : > { %4683 = vmatmul.mubr.msk.bf16.gmra.mrb[12].mxu1 %vm657_vm1, %v6964_v60 }
 0x186   : > { %4686 = vmatprep.mubr.msk.bf16.mxu1 %vm657_vm1, %v5946_v27 }
 0x18b   : > { %4591 = vmatmul.mubr.msk.bf16.vlgmr.msra.gmra.mrb[32].mxu0 %vm657_vm1, %v6062_v13 }
 0x18c   : > { %4594 = vmatprep.mubr.msk.bf16.mxu0 %vm657_vm1, %v6101_v15  ;;  %4623 = vmatpush3.bf16.msra.mxu0 %v6965_v61 }
 0x18d   : > { %4687 = vmatmul.mubr.msk.bf16.gmra.mrb[16].mxu1 %vm657_vm1, %v6040_v20 }
 0x18e   : > { %4692 = vmatprep.mubr.msk.bf16.mxu1 %vm657_vm1, %v6062_v13  ;;  %v831_v13 = vld [vmem:[#allocation2 + $0x220] sm:$0xff] }
 0x18f   : > { %v6358_v24 = vpack.c.bf16 %v832_v18, %v831_v13 }
 0x191   : > { %v2864_v23 = vrot.slane %v6358_v24, 4 }
 0x193   : > { %4595 = vmatmul.mubr.msk.bf16.gmra.mrb[36].mxu0 %vm657_vm1, %v6116_v28  ;;  %v6371_v21 = vsel %vm1177_vm2, %v2864_v23, %v2865_v50 }
 0x194   : > { %4598 = vmatprep.mubr.msk.bf16.mxu0 %vm657_vm1, %v6127_v37 }
 0x195   : > { %4693 = vmatmul.mubr.msk.bf16.vlgmr.msra.gmra.mrb[20].mxu1 %vm657_vm1, %v6101_v15 }
 0x196   : > { %4725 = vmatpush3.bf16.msra.mxu1 %v2667_v11  ;;  %4696 = vmatprep.mubr.msk.bf16.mxu1 %vm657_vm1, %v6116_v28 }
 0x197   : > { %5130 = vmatprep.subr.msk.bf16.mxu1 %vm1177_vm2, %v4076_v62 }
 0x19b   : > { %4599 = vmatmul.mubr.msk.bf16.gmra.mrb[40].mxu0 %vm657_vm1, %v6134_v6 }
 0x19c   : > { %4602 = vmatprep.mubr.msk.bf16.mxu0 %vm657_vm1, %v6153_v40 }
 0x19d   : > { %4697 = vmatmul.mubr.msk.bf16.gmra.mrb[24].mxu1 %vm657_vm1, %v6127_v37 }
 0x19e   : > { %4700 = vmatprep.mubr.msk.bf16.mxu1 %vm657_vm1, %v6134_v6 }
 0x1a3   : > { %4603 = vmatmul.mubr.msk.bf16.gmra.mrb[44].mxu0 %vm657_vm1, %v6168_v53 }
 0x1a4   : > { %4606 = vmatprep.mubr.msk.bf16.mxu0 %vm657_vm1, %v6179_v12 }
 0x1a5   : > { %4701 = vmatmul.mubr.msk.bf16.gmra.mrb[28].mxu1 %vm657_vm1, %v6153_v40 }
 0x1a6   : > { %4704 = vmatprep.mubr.msk.bf16.mxu1 %vm657_vm1, %v6168_v53 }
 0x1ab   : > { %4607 = vmatmul.mubr.msk.bf16.gmra.mrb[48].mxu0 %vm657_vm1, %v6186_v42 }
 0x1ac   : > { %4610 = vmatprep.mubr.msk.bf16.mxu0 %vm657_vm1, %v6201_v54 }
 0x1ad   : > { %4705 = vmatmul.mubr.msk.bf16.gmra.mrb[0].mxu1 %vm657_vm1, %v6179_v12 }
 0x1ae   : > { %4708 = vmatprep.mubr.msk.bf16.mxu1 %vm657_vm1, %v6186_v42 }
 0x1b3   : > { %4611 = vmatmul.mubr.msk.bf16.gmra.mrb[52].mxu0 %vm657_vm1, %v6220_v16 }
 0x1b4   : > { %4614 = vmatprep.mubr.msk.bf16.mxu0 %vm657_vm1, %v6231_v33 }
 0x1b5   : > { %4709 = vmatmul.mubr.msk.bf16.gmra.mrb[4].mxu1 %vm657_vm1, %v6201_v54 }
 0x1b6   : > { %4712 = vmatprep.mubr.msk.bf16.mxu1 %vm657_vm1, %v6220_v16 }
 0x1bb   : > { %4615 = vmatmul.mubr.msk.bf16.gmra.mrb[56].mxu0 %vm657_vm1, %v6238_v41 }
 0x1bc   : > { %4618 = vmatprep.mubr.msk.bf16.mxu0 %vm657_vm1, %v6251_v8 }
 0x1bd   : > { %4713 = vmatmul.mubr.msk.bf16.gmra.mrb[8].mxu1 %vm657_vm1, %v6231_v33 }
 0x1be   : > { %4716 = vmatprep.mubr.msk.bf16.mxu1 %vm657_vm1, %v6238_v41 }
 0x1c3   : > { %4619 = vmatmul.mubr.msk.bf16.gmra.mrb[60].mxu0 %vm657_vm1, %v6262_v47 }
 0x1c4   : > { %4624 = vmatprep.mubr.msk.bf16.mxu0 %vm657_vm1, %v5592_v52  ;;  %v2873_v52 = vsel %vm1177_vm2, %v4076_v62, 0 }
 0x1c5   : > { %4717 = vmatmul.mubr.msk.bf16.gmra.mrb[12].mxu1 %vm657_vm1, %v6251_v8 }
 0x1c6   : > { %4720 = vmatprep.mubr.msk.bf16.mxu1 %vm657_vm1, %v6262_v47 }
 0x1cb   : > { %4625 = vmatmul.mubr.msk.bf16.vlgmr.msra.gmra.mrb[32].mxu0 %vm657_vm1, %v5612_v19 }
 0x1cc   : > { %4628 = vmatprep.mubr.msk.bf16.mxu0 %vm657_vm1, %v5652_v46 }
 0x1cd   : > { %4721 = vmatmul.mubr.msk.bf16.gmra.mrb[16].mxu1 %vm657_vm1, %v6267_v38 }
 0x1ce   : > { %4726 = vmatprep.mubr.msk.bf16.mxu1 %vm657_vm1, %v5612_v19  ;;  %v2645_v19 = vshrl.u32 %v6358_v24, 16 }
 0x1d3   : > { %4629 = vmatmul.mubr.msk.bf16.gmra.mrb[36].mxu0 %vm657_vm1, %v5975_v4 }
 0x1d4   : > { %4632 = vmatprep.mubr.msk.bf16.mxu0 %vm657_vm1, %v6031_v58 }
 0x1d5   : > { %4727 = vmatmul.mubr.msk.bf16.vlgmr.msra.gmra.mrb[20].mxu1 %vm657_vm1, %v5652_v46  ;;  %v2648_v46 = vshll.u32 %v6358_v24, 16 }
 0x1d6   : > { %4759 = vmatpush3.bf16.msra.mxu1 %v2873_v52  ;;  %4730 = vmatprep.mubr.msk.bf16.mxu1 %vm657_vm1, %v5975_v4  ;;  %v2653_v4 = vshrl.u32 %v6360_v1, 16 }
 0x1d7   : > { %5131 = vmatprep.subr.msk.bf16.mxu1 %vm1177_vm2, %v4093_v14 }
 0x1db   : > { %4633 = vmatmul.mubr.msk.bf16.gmra.mrb[40].mxu0 %vm657_vm1, %v6055_v26 }
 0x1dd   : > { %4731 = vmatmul.mubr.msk.bf16.gmra.mrb[24].mxu1 %vm657_vm1, %v6031_v58  ;;  %v2656_v58 = vshll.u32 %v6360_v1, 16 }
 0x1de   : > { %4734 = vmatprep.mubr.msk.bf16.mxu1 %vm657_vm1, %v6055_v26  ;;  %v2647_v26 = vrot.slane %v2645_v19, 3 }
 0x1e5   : > { %4735 = vmatmul.mubr.msk.bf16.gmra.mrb[28].mxu1 %vm657_vm1, %v6931_v57  ;;  %v2650_v57 = vrot.slane %v2648_v46, 4 }
 0x1e6   : > { %4738 = vmatprep.mubr.msk.bf16.mxu1 %vm657_vm1, %v6935_v43 }
 0x1e7   : > { %v2651_v43 = vor.u32 %v2650_v57, %v2647_v26  ;;  %v5163_v57 = vld [vmem:[%s6747_s5 + $0x10] ss:$0 sps:$4 sm:$0xff]  }
 0x1ed   : > { %4739 = vmatmul.mubr.msk.bf16.gmra.mrb[0].mxu1 %vm657_vm1, %v6954_v2  ;;  %v5171_v2 = vld [vmem:[%s5253_s10 + $0x38] sm:$0xff]  }
 0x1ee   : > { %4742 = vmatprep.mubr.msk.bf16.mxu1 %vm657_vm1, %v6956_v9  ;;  %v5174_v9 = vld [vmem:[%s5253_s10 + $0x40] sm:$0xff]  }
 0x1f5   : > { %4743 = vmatmul.mubr.msk.bf16.gmra.mrb[4].mxu1 %vm657_vm1, %v6958_v22  ;;  %v5177_v22 = vld [vmem:[%s5253_s10 + $0x68] sm:$0xff]  }
 0x1f6   : > { %4746 = vmatprep.mubr.msk.bf16.mxu1 %vm657_vm1, %v6960_v31 }
 0x1fd   : > { %4747 = vmatmul.mubr.msk.bf16.gmra.mrb[8].mxu1 %vm657_vm1, %v5934_v29  ;;  %v2655_v29 = vrot.slane %v2653_v4, 3 }
 0x1fe   : > { %4750 = vmatprep.mubr.msk.bf16.mxu1 %vm657_vm1, %v5955_v63  ;;  %v2658_v63 = vrot.slane %v2656_v58, 4 }
 0x200   : > { %v2659_v34 = vor.u32 %v2658_v63, %v2655_v29  ;;  %v3504_v29 = vsel %vm1177_vm2, %v5163_v57, 0 }
 0x202   : > { %v2660_v39 = vsel %vm871_vm3, %v2651_v43, %v2659_v34  ;;  %v6593_v43 = vld [vmem:[%s6746_s4] ss:$0 sm:$0xff] }
 0x205   : > { %4751 = vmatmul.mubr.msk.bf16.gmra.mrb[12].mxu1 %vm657_vm1, %v5989_v36  ;;  %v5168_v36 = vld [vmem:[%s5253_s10 + $0x18] sm:$0xff]  }
 0x206   : > { %4754 = vmatprep.mubr.msk.bf16.mxu1 %vm657_vm1, %v6005_v44  ;;  %v5167_v44 = vld [vmem:[%s5253_s10 + $0x8] sm:$0xff]  }
 0x20d   : > { %4755 = vmatmul.mubr.msk.bf16.gmra.mrb[16].mxu1 %vm657_vm1, %v2660_v39 }
 0x20e   : > { %4760 = vmatprep.mubr.msk.bf16.mxu1 %vm657_vm1, %v5532_v49  ;;  %v5161_v49 = vld [vmem:[%s6747_s5] sm:$0xff]  }
 0x20f   : > { %4826 = vmatprep.subr.bf16.mxu0 %v5161_v49 }
 0x210   : > { %4827 = vmatpush3.bf16.msra.mxu0 %v5161_v49 }
 0x215   : > { %4761 = vmatmul.mubr.msk.bf16.vlgmr.msra.gmra.mrb[20].mxu1 %vm657_vm1, %v5596_v56  ;;  %v5165_v56 = vld [vmem:[%s5253_s10] sm:$0xff]  }
 0x216   : > { %4793 = vmatpush3.bf16.msra.mxu1 %v3081_v45  ;;  %4764 = vmatprep.mubr.msk.bf16.mxu1 %vm657_vm1, %v5589_v48  ;;  %v5162_v48 = vld [vmem:[%s6747_s5 + $0x8] sm:$0xff]  }
 0x217   : > { %3363 = vrot.lane.b32.xlu0 %v5165_v56, %s5190_s18  ;;  %4828 = vmatprep.subr.bf16.mxu0 %v5162_v48 }
 0x218   : > { %4829 = vmatpush3.bf16.msra.mxu0 %v5162_v48 }
 0x219   : > { %5132 = vmatprep.subr.msk.bf16.mxu0 %vm1177_vm2, %v5163_v57 }
 0x21b   : > { %3365 = vrot.lane.b32.xlu0 %v5167_v44, %s5190_s18 }
 0x21c   : > { %4831 = vmatpush3.bf16.msra.mxu0 %v3504_v29 }
 0x21d   : > { %4765 = vmatmul.mubr.msk.bf16.gmra.mrb[24].mxu1 %vm657_vm1, %v5649_v35  ;;  %v5166_v35 = vld [vmem:[%s5253_s10 + $0x10] sm:$0xff]  }
 0x21e   : > { %4768 = vmatprep.mubr.msk.bf16.mxu1 %vm657_vm1, %v6934_v59  ;;  %3367 = vrot.lane.b32.xlu1 %v5166_v35, %s5190_s18  ;;  %v5169_v59 = vld [vmem:[%s5253_s10 + $0x28] sm:$0xff]  }
 0x222   : > { %3369 = vrot.lane.b32.xlu1 %v5168_v36, %s5190_s18 }
 0x225   : > { %4769 = vmatmul.mubr.msk.bf16.gmra.mrb[28].mxu1 %vm657_vm1, %v6939_v5  ;;  %v5170_v5 = vld [vmem:[%s5253_s10 + $0x20] sm:$0xff]  }
 0x226   : > { %4772 = vmatprep.mubr.msk.bf16.mxu1 %vm657_vm1, %v6955_v51  ;;  %3373 = vrot.lane.b32.xlu1 %v5169_v59, %s5190_s18  ;;  %v5173_v51 = vld [vmem:[%s5253_s10 + $0x48] sm:$0xff]  }
 0x227   : > { %3371 = vrot.lane.b32.xlu0 %v5170_v5, %s5190_s18 }
 0x22a   : > { %3377 = vrot.lane.b32.xlu1 %v5171_v2, %s5190_s18 }
 0x22b   : > { %3375 = vrot.lane.b32.xlu0 %v5172_v3, %s5190_s18 }
 0x22d   : > { %4773 = vmatmul.mubr.msk.bf16.gmra.mrb[0].mxu1 %vm657_vm1, %v6957_v55  ;;  %v5176_v55 = vld [vmem:[%s5253_s10 + $0x50] sm:$0xff]  }
 0x22e   : > { %4776 = vmatprep.mubr.msk.bf16.mxu1 %vm657_vm1, %v6959_v25  ;;  %3381 = vrot.lane.b32.xlu1 %v5173_v51, %s5190_s18  ;;  %v5178_v25 = vld [vmem:[%s5253_s10 + $0x60] sm:$0xff]  }
 0x22f   : > { %3379 = vrot.lane.b32.xlu0 %v5174_v9, %s5190_s18 }
 0x232   : > { %3385 = vrot.lane.b32.xlu1 %v5175_v32, %s5190_s18 }
 0x233   : > { %3383 = vrot.lane.b32.xlu0 %v5176_v55, %s5190_s18 }
 0x235   : > { %4777 = vmatmul.mubr.msk.bf16.gmra.mrb[4].mxu1 %vm657_vm1, %v6961_v17 }
 0x236   : > { %4780 = vmatprep.mubr.msk.bf16.mxu1 %vm657_vm1, %v6962_v30  ;;  %3389 = vrot.lane.b32.xlu1 %v5177_v22, %s5190_s18 }
 0x237   : > { %3387 = vrot.lane.b32.xlu0 %v5178_v25, %s5190_s18 }
 0x23d   : > { %4781 = vmatmul.mubr.msk.bf16.gmra.mrb[8].mxu1 %vm657_vm1, %v6963_v10 }
 0x23e   : > { %4784 = vmatprep.mubr.msk.bf16.mxu1 %vm657_vm1, %v6964_v60 }
 0x245   : > { %4785 = vmatmul.mubr.msk.bf16.gmra.mrb[12].mxu1 %vm657_vm1, %v5946_v27  ;;  %v5179_v27 = vld [vmem:[%s5253_s10 + $0x78] sm:$0xff]  }
 0x246   : > { %4788 = vmatprep.mubr.msk.bf16.mxu1 %vm657_vm1, %v6040_v20  ;;  %3393 = vrot.lane.b32.xlu1 %v5179_v27, %s5190_s18  ;;  %v5180_v20 = vld [vmem:[%s5253_s10 + $0x70] sm:$0xff]  }
 0x247   : > { %3391 = vrot.lane.b32.xlu0 %v5180_v20, %s5190_s18 }
 0x24d   : > { %4789 = vmatmul.mubr.msk.bf16.gmra.mrb[16].mxu1 %vm657_vm1, %v6371_v21 }
 0x24e   : > { %4794 = vmatprep.mubr.msk.bf16.mxu1 %vm657_vm1, %v6101_v15 }
 0x255   : > { %4795 = vmatmul.mubr.msk.bf16.vlgmr.msra.gmra.mrb[20].mxu1 %vm657_vm1, %v6116_v28 }
 0x256   : > { %4798 = vmatprep.mubr.msk.bf16.mxu1 %vm657_vm1, %v6127_v37 }
 0x25d   : > { %4799 = vmatmul.mubr.msk.bf16.gmra.mrb[24].mxu1 %vm657_vm1, %v6134_v6 }
 0x25e   : > { %4802 = vmatprep.mubr.msk.bf16.mxu1 %vm657_vm1, %v6153_v40 }
 0x265   : > { %4803 = vmatmul.mubr.msk.bf16.gmra.mrb[28].mxu1 %vm657_vm1, %v6168_v53 }
 0x266   : > { %4806 = vmatprep.mubr.msk.bf16.mxu1 %vm657_vm1, %v6179_v12 }
 0x26d   : > { %4807 = vmatmul.mubr.msk.bf16.gmra.mrb[0].mxu1 %vm657_vm1, %v6186_v42 }
 0x26e   : > { %4810 = vmatprep.mubr.msk.bf16.mxu1 %vm657_vm1, %v6201_v54  ;;  %v3068_v54 = vrot.slane %v2645_v19, 4 }
 0x275   : > { %4811 = vmatmul.mubr.msk.bf16.gmra.mrb[4].mxu1 %vm657_vm1, %v6220_v16  ;;  %v3069_v16 = vrot.slane %v2648_v46, 5 }
 0x276   : > { %4814 = vmatprep.mubr.msk.bf16.mxu1 %vm657_vm1, %v6231_v33  ;;  %v6527_v15 = vpop.f32.mrb[44].mxu0  ;;  %v3071_v33 = vrot.slane %v2653_v4, 4 }
 0x277   : > { %v6529_v28 = vpop.f32.mrb[45].mxu0 }
 0x278   : > { %v6531_v37 = vpop.f32.mrb[46].mxu0 }
 0x279   : > { %v6533_v6 = vpop.f32.mrb[47].mxu0 }
 0x27d   : > { %4815 = vmatmul.mubr.msk.bf16.gmra.mrb[8].mxu1 %vm657_vm1, %v6238_v41  ;;  %v3072_v41 = vrot.slane %v2656_v58, 5 }
 0x27e   : > { %4818 = vmatprep.mubr.msk.bf16.mxu1 %vm657_vm1, %v6251_v8  ;;  %v6539_v40 = vpop.f32.mrb[48].mxu0  ;;  %v3070_v8 = vor.u32 %v3069_v16, %v3068_v54 }
 0x27f   : > { %v6541_v53 = vpop.f32.mrb[49].mxu0  ;;  %v3073_v31 = vor.u32 %v3072_v41, %v3071_v33 }
 0x280   : > { %v6543_v12 = vpop.f32.mrb[50].mxu0 }
 0x281   : > { %v6545_v42 = vpop.f32.mrb[51].mxu0  ;;  %v3074_v60 = vsel %vm1653_vm4, %v3070_v8, %v3073_v31 }
 0x285   : > { %4819 = vmatmul.mubr.msk.bf16.gmra.mrb[12].mxu1 %vm657_vm1, %v6262_v47 }
 0x286   : > { %4822 = vmatprep.mubr.msk.bf16.mxu1 %vm657_vm1, %v6267_v38  ;;  %v6559_v17 = vpop.f32.mrb[52].mxu0 }
 0x287   : > { %v6561_v30 = vpop.f32.mrb[53].mxu0 }
 0x288   : > { %v6563_v10 = vpop.f32.mrb[54].mxu0 }
 0x289   : > { %v6566_v61 = vpop.f32.mrb[55].mxu0  ;;  %v3364_v59 = vpop.permute.xlu0 %3363 }
 0x28d   : > { %4823 = vmatmul.mubr.msk.bf16.gmra.mrb[16].mxu1 %vm657_vm1, %v3074_v60  ;;  %v3366_v16 = vpop.permute.xlu0 %3365 }
 0x28e   : > { %v6569_v11 = vpop.f32.mrb[56].mxu0 }
 0x28f   : > { %v6571_v47 = vpop.f32.mrb[57].mxu0 }
 0x290   : > { %v6573_v62 = vpop.f32.mrb[58].mxu0 }
 0x291   : > { %v6575_v38 = vpop.f32.mrb[59].mxu0 }
 0x296   : > { %v6577_v13 = vpop.f32.mrb[60].mxu0 }
 0x297   : > { %v6579_v18 = vpop.f32.mrb[61].mxu0 }
 0x298   : > { %v6581_v7 = vpop.f32.mrb[62].mxu0 }
 0x299   : > { %v6583_v0 = vpop.f32.mrb[63].mxu0 }
 0x29e   : > { %v4626_v24 = vpop.f32.mrb[32].mxu0 }
 0x29f   : > { %v2071_v1 = vpop.f32.mrb[33].mxu0 }
 0x2a0   : > { %v4627_v23 = vpop.f32.mrb[34].mxu0 }
 0x2a1   : > { %v2074_v50 = vpop.f32.mrb[35].mxu0 }
 0x2a6   : > { %v4630_v21 = vpop.f32.mrb[36].mxu0 }
 0x2a7   : > { %v2087_v52 = vpop.f32.mrb[37].mxu0 }
 0x2a8   : > { %v4631_v14 = vpop.f32.mrb[38].mxu0 }
 0x2a9   : > { %v2090_v19 = vpop.f32.mrb[39].mxu0 }
 0x2ae   : > { %v4634_v46 = vpop.f32.mrb[40].mxu0 }
 0x2af   : > { %v2103_v4 = vpop.f32.mrb[41].mxu0 }
 0x2b0   : > { %v4635_v58 = vpop.f32.mrb[42].mxu0 }
 0x2b1   : > { %v2106_v26 = vpop.f32.mrb[43].mxu0 }
 0x328   : > { %v4796_v63 = vpop.f32.mrb[20].mxu1 }
 0x329   : > { %v4866_v34 = vadd.f32 %v4796_v63, %v4626_v24  ;;  %v3117_v39 = vpop.f32.mrb[21].mxu1 }
 0x32a   : > { %v4867_v45 = vadd.f32 %v3117_v39, %v2071_v1  ;;  %v4797_v49 = vpop.f32.mrb[22].mxu1 }
 0x32b   : > { %v3285_v48 = vadd.f32 %v4866_v34, %v6593_v43  ;;  %v4868_v56 = vadd.f32 %v4797_v49, %v4627_v23  ;;  %v3120_v35 = vpop.f32.mrb[23].mxu1  ;;  %v3368_v23 = vpop.permute.xlu1 %3367 }
 0x32c   : > { %v3283_v44 = vadd.f32 %v4867_v45, %v6593_v43  ;;  %v4869_v36 = vadd.f32 %v3120_v35, %v2074_v50 }
 0x32d   : > { %v3286_v5 = vadd.f32 %v4868_v56, %v6593_v43  ;;  %v3317_v3 = vmax.f32 %v3285_v48, 0.0 }
 0x32e   : > { %v3284_v2 = vadd.f32 %v4869_v36, %v6593_v43  ;;  %v3315_v9 = vmax.f32 %v3283_v44, 0.0 }
 0x32f   : > { %v3318_v51 = vmax.f32 %v3286_v5, 0.0  ;;  %v3370_v56 = vpop.permute.xlu1 %3369 }
 0x330   : > { %v3316_v32 = vmax.f32 %v3284_v2, 0.0  ;;  %v4800_v55 = vpop.f32.mrb[24].mxu1 }
 0x331   : > { %v3348_v22 = vpack.c.bf16 %v3318_v51, %v3317_v3  ;;  %v4870_v25 = vadd.f32 %v4800_v55, %v4630_v21  ;;  %v3133_v27 = vpop.f32.mrb[25].mxu1 }
 0x332   : > { %v3347_v20 = vpack.c.bf16 %v3316_v32, %v3315_v9  ;;  %v4871_v54 = vadd.f32 %v3133_v27, %v2087_v52  ;;  %v4801_v33 = vpop.f32.mrb[26].mxu1 }
 0x333   : > { %v3289_v41 = vadd.f32 %v4870_v25, %v6593_v43  ;;  %v4872_v8 = vadd.f32 %v4801_v33, %v4631_v14  ;;  %v3136_v31 = vpop.f32.mrb[27].mxu1  ;;  %v3400_v50 = vsel %vm657_vm1, %v3348_v22, %v3366_v16  ;;  %v3374_v33 = vpop.permute.xlu1 %3373 }
 0x334   : > { %v3397_v60 = vsel %vm657_vm1, %v3347_v20, %v3364_v59  ;;  %v3287_v24 = vadd.f32 %v4871_v54, %v6593_v43  ;;  %v4873_v1 = vadd.f32 %v3136_v31, %v2090_v19 }
 0x335   : > { %v3290_v21 = vadd.f32 %v4872_v8, %v6593_v43  ;;  %4832 = vmatprep.mubr.msk.bf16.mxu0 %vm3470_vm5, %v3397_v60  ;;  %v3321_v57 = vmax.f32 %v3289_v41, 0.0 }
 0x336   : > { %v3288_v52 = vadd.f32 %v4873_v1, %v6593_v43  ;;  %4833 = vmatmul.mubr.msk.bf16.vlgmr.msra.gmra.mrb[64].mxu0 %vm3470_vm5, %v3400_v50  ;;  %v3319_v14 = vmax.f32 %v3287_v24, 0.0 }
 0x337   : > { %v3322_v29 = vmax.f32 %v3290_v21, 0.0 }
 0x338   : > { %v3320_v63 = vmax.f32 %v3288_v52, 0.0  ;;  %v4804_v34 = vpop.f32.mrb[28].mxu1 }
 0x339   : > { %v3350_v39 = vpack.c.bf16 %v3322_v29, %v3321_v57  ;;  %v4874_v45 = vadd.f32 %v4804_v34, %v4634_v46  ;;  %v3149_v49 = vpop.f32.mrb[29].mxu1 }
 0x33a   : > { %v3349_v19 = vpack.c.bf16 %v3320_v63, %v3319_v14  ;;  %v4875_v48 = vadd.f32 %v3149_v49, %v2103_v4  ;;  %v4805_v35 = vpop.f32.mrb[30].mxu1  ;;  %v3378_v49 = vpop.permute.xlu1 %3377 }
 0x33b   : > { %v3293_v44 = vadd.f32 %v4874_v45, %v6593_v43  ;;  %v4876_v36 = vadd.f32 %v4805_v35, %v4635_v58  ;;  %v3152_v59 = vpop.f32.mrb[31].mxu1  ;;  %v3406_v51 = vsel %vm657_vm1, %v3350_v39, %v3370_v56 }
 0x33c   : > { %v3403_v5 = vsel %vm657_vm1, %v3349_v19, %v3368_v23  ;;  %v3291_v2 = vadd.f32 %v4875_v48, %v6593_v43  ;;  %v4877_v3 = vadd.f32 %v3152_v59, %v2106_v26  ;;  %v3372_v26 = vpop.permute.xlu0 %3371 }
 0x33d   : > { %v3294_v9 = vadd.f32 %v4876_v36, %v6593_v43  ;;  %4836 = vmatprep.mubr.msk.bf16.mxu0 %vm3470_vm5, %v3403_v5  ;;  %v3325_v4 = vmax.f32 %v3293_v44, 0.0 }
 0x33e   : > { %v3292_v46 = vadd.f32 %v4877_v3, %v6593_v43  ;;  %4837 = vmatmul.mubr.msk.bf16.gmra.mrb[68].mxu0 %vm3470_vm5, %v3406_v51  ;;  %v3323_v55 = vmax.f32 %v3291_v2, 0.0 }
 0x33f   : > { %v3326_v32 = vmax.f32 %v3294_v9, 0.0 }
 0x340   : > { %v3324_v58 = vmax.f32 %v3292_v46, 0.0  ;;  %v4808_v22 = vpop.f32.mrb[0].mxu1 }
 0x341   : > { %v3352_v25 = vpack.c.bf16 %v3326_v32, %v3325_v4  ;;  %v4878_v27 = vadd.f32 %v4808_v22, %v6527_v15  ;;  %v3165_v20 = vpop.f32.mrb[1].mxu1  ;;  %v3382_v22 = vpop.permute.xlu1 %3381 }
 0x342   : > { %v3351_v54 = vpack.c.bf16 %v3324_v58, %v3323_v55  ;;  %v4879_v16 = vadd.f32 %v3165_v20, %v6529_v28  ;;  %v4809_v41 = vpop.f32.mrb[2].mxu1 }
 0x343   : > { %v3297_v8 = vadd.f32 %v4878_v27, %v6593_v43  ;;  %v4880_v31 = vadd.f32 %v4809_v41, %v6531_v37  ;;  %v3168_v60 = vpop.f32.mrb[3].mxu1  ;;  %v3412_v15 = vsel %vm657_vm1, %v3352_v25, %v3374_v33 }
 0x344   : > { %v3295_v24 = vadd.f32 %v4879_v16, %v6593_v43  ;;  %v3409_v1 = vsel %vm657_vm1, %v3351_v54, %v3372_v26  ;;  %v4881_v23 = vadd.f32 %v3168_v60, %v6533_v6  ;;  %v3376_v6 = vpop.permute.xlu0 %3375 }
 0x345   : > { %v3298_v50 = vadd.f32 %v4880_v31, %v6593_v43  ;;  %4840 = vmatprep.mubr.msk.bf16.mxu0 %vm3470_vm5, %v3409_v1  ;;  %v3329_v21 = vmax.f32 %v3297_v8, 0.0 }
 0x346   : > { %v3296_v28 = vadd.f32 %v4881_v23, %v6593_v43  ;;  %4841 = vmatmul.mubr.msk.bf16.gmra.mrb[72].mxu0 %vm3470_vm5, %v3412_v15  ;;  %v3327_v37 = vmax.f32 %v3295_v24, 0.0 }
 0x347   : > { %v3330_v52 = vmax.f32 %v3298_v50, 0.0 }
 0x348   : > { %v3328_v57 = vmax.f32 %v3296_v28, 0.0  ;;  %v4812_v29 = vpop.f32.mrb[4].mxu1 }
 0x349   : > { %v3354_v14 = vpack.c.bf16 %v3330_v52, %v3329_v21  ;;  %v4882_v63 = vadd.f32 %v4812_v29, %v6539_v40  ;;  %v3181_v34 = vpop.f32.mrb[5].mxu1  ;;  %v3386_v21 = vpop.permute.xlu1 %3385 }
 0x34a   : > { %v3353_v39 = vpack.c.bf16 %v3328_v57, %v3327_v37  ;;  %v4883_v45 = vadd.f32 %v3181_v34, %v6541_v53  ;;  %v4813_v19 = vpop.f32.mrb[6].mxu1 }
 0x34b   : > { %v3301_v48 = vadd.f32 %v4882_v63, %v6593_v43  ;;  %v4884_v56 = vadd.f32 %v4813_v19, %v6543_v12  ;;  %v3184_v35 = vpop.f32.mrb[7].mxu1  ;;  %v3418_v40 = vsel %vm657_vm1, %v3354_v14, %v3378_v49 }
 0x34c   : > { %v3299_v44 = vadd.f32 %v4883_v45, %v6593_v43  ;;  %v3415_v36 = vsel %vm657_vm1, %v3353_v39, %v3376_v6  ;;  %v4885_v59 = vadd.f32 %v3184_v35, %v6545_v42  ;;  %v3380_v42 = vpop.permute.xlu0 %3379 }
 0x34d   : > { %v3302_v5 = vadd.f32 %v4884_v56, %v6593_v43  ;;  %4844 = vmatprep.mubr.msk.bf16.mxu0 %vm3470_vm5, %v3415_v36  ;;  %v3333_v2 = vmax.f32 %v3301_v48, 0.0 }
 0x34e   : > { %v3300_v53 = vadd.f32 %v4885_v59, %v6593_v43  ;;  %4845 = vmatmul.mubr.msk.bf16.gmra.mrb[76].mxu0 %vm3470_vm5, %v3418_v40  ;;  %v3331_v12 = vmax.f32 %v3299_v44, 0.0  ;;  %v3390_v59 = vpop.permute.xlu1 %3389 }
 0x34f   : > { %v3334_v3 = vmax.f32 %v3302_v5, 0.0 }
 0x350   : > { %v3332_v51 = vmax.f32 %v3300_v53, 0.0  ;;  %v4816_v9 = vpop.f32.mrb[8].mxu1 }
 0x351   : > { %v3356_v46 = vpack.c.bf16 %v3334_v3, %v3333_v2  ;;  %v4886_v4 = vadd.f32 %v4816_v9, %v6559_v17  ;;  %v3197_v32 = vpop.f32.mrb[9].mxu1 }
 0x352   : > { %v3355_v55 = vpack.c.bf16 %v3332_v51, %v3331_v12  ;;  %v4887_v58 = vadd.f32 %v3197_v32, %v6561_v30  ;;  %v4817_v25 = vpop.f32.mrb[10].mxu1 }
 0x353   : > { %v3305_v27 = vadd.f32 %v4886_v4, %v6593_v43  ;;  %v4888_v20 = vadd.f32 %v4817_v25, %v6563_v10  ;;  %v3200_v26 = vpop.f32.mrb[11].mxu1  ;;  %v3424_v17 = vsel %vm657_vm1, %v3356_v46, %v3382_v22  ;;  %v3394_v22 = vpop.permute.xlu1 %3393 }
 0x354   : > { %v3303_v54 = vadd.f32 %v4887_v58, %v6593_v43  ;;  %v3421_v16 = vsel %vm657_vm1, %v3355_v55, %v3380_v42  ;;  %v4889_v33 = vadd.f32 %v3200_v26, %v6566_v61  ;;  %v3384_v61 = vpop.permute.xlu0 %3383 }
 0x355   : > { %v3306_v41 = vadd.f32 %v4888_v20, %v6593_v43  ;;  %4848 = vmatprep.mubr.msk.bf16.mxu0 %vm3470_vm5, %v3421_v16  ;;  %v3337_v8 = vmax.f32 %v3305_v27, 0.0 }
 0x356   : > { %v3304_v30 = vadd.f32 %v4889_v33, %v6593_v43  ;;  %4849 = vmatmul.mubr.msk.bf16.gmra.mrb[80].mxu0 %vm3470_vm5, %v3424_v17  ;;  %v3335_v10 = vmax.f32 %v3303_v54, 0.0 }
 0x357   : > { %v3338_v31 = vmax.f32 %v3306_v41, 0.0 }
 0x358   : > { %v3336_v60 = vmax.f32 %v3304_v30, 0.0  ;;  %v4820_v24 = vpop.f32.mrb[12].mxu1 }
 0x359   : > { %v3358_v1 = vpack.c.bf16 %v3338_v31, %v3337_v8  ;;  %v4890_v23 = vadd.f32 %v4820_v24, %v6569_v11  ;;  %v3213_v15 = vpop.f32.mrb[13].mxu1 }
 0x35a   : > { %v3357_v50 = vpack.c.bf16 %v3336_v60, %v3335_v10  ;;  %v4891_v28 = vadd.f32 %v3213_v15, %v6571_v47  ;;  %v4821_v52 = vpop.f32.mrb[14].mxu1 }
 0x35b   : > { %v3309_v37 = vadd.f32 %v4890_v23, %v6593_v43  ;;  %v4892_v57 = vadd.f32 %v4821_v52, %v6573_v62  ;;  %v3216_v29 = vpop.f32.mrb[15].mxu1  ;;  %v3430_v11 = vsel %vm657_vm1, %v3358_v1, %v3386_v21 }
 0x35c   : > { %v3307_v14 = vadd.f32 %v4891_v28, %v6593_v43  ;;  %v3427_v63 = vsel %vm657_vm1, %v3357_v50, %v3384_v61  ;;  %v4893_v34 = vadd.f32 %v3216_v29, %v6575_v38  ;;  %v3388_v38 = vpop.permute.xlu0 %3387 }
 0x35d   : > { %v3310_v6 = vadd.f32 %v4892_v57, %v6593_v43  ;;  %4852 = vmatprep.mubr.msk.bf16.mxu0 %vm3470_vm5, %v3427_v63  ;;  %v3341_v39 = vmax.f32 %v3309_v37, 0.0 }
 0x35e   : > { %v3308_v47 = vadd.f32 %v4893_v34, %v6593_v43  ;;  %4853 = vmatmul.mubr.msk.bf16.gmra.mrb[84].mxu0 %vm3470_vm5, %v3430_v11  ;;  %v3339_v62 = vmax.f32 %v3307_v14, 0.0 }
 0x35f   : > { %v3342_v45 = vmax.f32 %v3310_v6, 0.0 }
 0x360   : > { %v3340_v49 = vmax.f32 %v3308_v47, 0.0  ;;  %v4824_v19 = vpop.f32.mrb[16].mxu1  ;;  %v3392_v55 = vpop.permute.xlu0 %3391 }
 0x361   : > { %v3360_v48 = vpack.c.bf16 %v3342_v45, %v3341_v39  ;;  %v4894_v56 = vadd.f32 %v4824_v19, %v6577_v13  ;;  %v3229_v35 = vpop.f32.mrb[17].mxu1 }
 0x362   : > { %v3359_v44 = vpack.c.bf16 %v3340_v49, %v3339_v62  ;;  %v4895_v36 = vadd.f32 %v3229_v35, %v6579_v18  ;;  %v4825_v40 = vpop.f32.mrb[18].mxu1 }
 0x363   : > { %v3313_v5 = vadd.f32 %v4894_v56, %v6593_v43  ;;  %v4896_v53 = vadd.f32 %v4825_v40, %v6581_v7  ;;  %v3232_v2 = vpop.f32.mrb[19].mxu1  ;;  %v3436_v13 = vsel %vm657_vm1, %v3360_v48, %v3390_v59 }
 0x364   : > { %v3311_v3 = vadd.f32 %v4895_v36, %v6593_v43  ;;  %v3433_v12 = vsel %vm657_vm1, %v3359_v44, %v3388_v38  ;;  %v4897_v51 = vadd.f32 %v3232_v2, %v6583_v0 }
 0x365   : > { %v3314_v9 = vadd.f32 %v4896_v53, %v6593_v43  ;;  %4856 = vmatprep.mubr.msk.bf16.mxu0 %vm3470_vm5, %v3433_v12  ;;  %v3345_v46 = vmax.f32 %v3313_v5, 0.0 }
 0x366   : > { %v3312_v18 = vadd.f32 %v4897_v51, %v6593_v43  ;;  %4857 = vmatmul.mubr.msk.bf16.gmra.mrb[88].mxu0 %vm3470_vm5, %v3436_v13  ;;  %v3343_v7 = vmax.f32 %v3311_v3, 0.0  ;;  %v6682_v43 = vld [vmem:[%s6748_s6] ss:$0 sm:$0xff] }
 0x367   : > { %v3346_v4 = vmax.f32 %v3314_v9, 0.0 }
 0x368   : > { %v3344_v32 = vmax.f32 %v3312_v18, 0.0 }
 0x369   : > { %v3362_v42 = vpack.c.bf16 %v3346_v4, %v3345_v46 }
 0x36a   : > { %v3361_v58 = vpack.c.bf16 %v3344_v32, %v3343_v7 }
 0x36b   : > { %v3442_v25 = vsel %vm657_vm1, %v3362_v42, %v3394_v22 }
 0x36c   : > { %v3439_v0 = vsel %vm657_vm1, %v3361_v58, %v3392_v55 }
 0x36d   : > { %4860 = vmatprep.mubr.msk.bf16.mxu0 %vm3470_vm5, %v3439_v0 }
 0x36e   : > { %4861 = vmatmul.mubr.msk.bf16.gmra.mrb[92].mxu0 %vm3470_vm5, %v3442_v25 }
 0x409   : > { %v4834_v27 = vpop.f32.mrb[64].mxu0 }
 0x40a   : > { %v3549_v20 = vadd.f32 %v4834_v27, %v6682_v43  ;;  %v3540_v26 = vpop.f32.mrb[65].mxu0 }
 0x40b   : > { %v3541_v54 = vadd.f32 %v6682_v43, %v3540_v26  ;;  %v4835_v16 = vpop.f32.mrb[66].mxu0 }
 0x40c   : > { %v3552_v33 = vadd.f32 %v4835_v16, %v6682_v43  ;;  %v3543_v17 = vpop.f32.mrb[67].mxu0  ;;  %v3669_v30 = vmax.f32 %v3549_v20, 0.0 }
 0x40d   : > { %v3544_v41 = vadd.f32 %v6682_v43, %v3543_v17  ;;  %v3667_v31 = vmax.f32 %v3541_v54, 0.0 }
 0x40e   : > { %v3670_v8 = vmax.f32 %v3552_v33, 0.0 }
 0x40f   : > { %v3668_v10 = vmax.f32 %v3544_v41, 0.0 }
 0x410   : > { %v4207_v60 = vpack.c.bf16 %v3670_v8, %v3669_v30 }
 0x411   : > { %v4202_v24 = vpack.c.bf16 %v3668_v10, %v3667_v31  ;;  %v4838_v1 = vpop.f32.mrb[68].mxu0 }
 0x412   : > { %4279 = vst [vmem:[%s6693_s28 + $0x8] sm:$0xff] %v4207_v60   ;;  %v3565_v23 = vadd.f32 %v4838_v1, %v6682_v43  ;;  %v3556_v15 = vpop.f32.mrb[69].mxu0 }
 0x413   : > { %4203 = vst [vmem:[%s6693_s28] sm:$0xff] %v4202_v24   ;;  %v3557_v61 = vadd.f32 %v6682_v43, %v3556_v15  ;;  %v4839_v50 = vpop.f32.mrb[70].mxu0 }
 0x414   : > { %v3568_v28 = vadd.f32 %v4839_v50, %v6682_v43  ;;  %v3559_v21 = vpop.f32.mrb[71].mxu0  ;;  %v3673_v37 = vmax.f32 %v3565_v23, 0.0 }
 0x415   : > { %v3560_v52 = vadd.f32 %v6682_v43, %v3559_v21  ;;  %v3671_v29 = vmax.f32 %v3557_v61, 0.0 }
 0x416   : > { %v3674_v57 = vmax.f32 %v3568_v28, 0.0 }
 0x417   : > { %v3672_v14 = vmax.f32 %v3560_v52, 0.0 }
 0x418   : > { %v4217_v63 = vpack.c.bf16 %v3674_v57, %v3673_v37 }
 0x419   : > { %v4212_v34 = vpack.c.bf16 %v3672_v14, %v3671_v29  ;;  %v4842_v11 = vpop.f32.mrb[72].mxu0 }
 0x41a   : > { %4281 = vst [vmem:[%s6693_s28 + $0x18] sm:$0xff] %v4217_v63   ;;  %v3581_v6 = vadd.f32 %v4842_v11, %v6682_v43  ;;  %v3572_v47 = vpop.f32.mrb[73].mxu0 }
 0x41b   : > { %4280 = vst [vmem:[%s6693_s28 + $0x10] sm:$0xff] %v4212_v34   ;;  %v3573_v39 = vadd.f32 %v6682_v43, %v3572_v47  ;;  %v4843_v45 = vpop.f32.mrb[74].mxu0 }
 0x41c   : > { %v3584_v62 = vadd.f32 %v4843_v45, %v6682_v43  ;;  %v3575_v49 = vpop.f32.mrb[75].mxu0  ;;  %v3677_v48 = vmax.f32 %v3581_v6, 0.0 }
 0x41d   : > { %v3576_v19 = vadd.f32 %v6682_v43, %v3575_v49  ;;  %v3675_v35 = vmax.f32 %v3573_v39, 0.0 }
 0x41e   : > { %v3678_v56 = vmax.f32 %v3584_v62, 0.0 }
 0x41f   : > { %v3676_v38 = vmax.f32 %v3576_v19, 0.0 }
 0x420   : > { %v4227_v44 = vpack.c.bf16 %v3678_v56, %v3677_v48 }
 0x421   : > { %v4222_v36 = vpack.c.bf16 %v3676_v38, %v3675_v35  ;;  %v4846_v59 = vpop.f32.mrb[76].mxu0 }
 0x422   : > { %4283 = vst [vmem:[%s6693_s28 + $0x28] sm:$0xff] %v4227_v44   ;;  %v3597_v40 = vadd.f32 %v4846_v59, %v6682_v43  ;;  %v3588_v5 = vpop.f32.mrb[77].mxu0 }
 0x423   : > { %4282 = vst [vmem:[%s6693_s28 + $0x20] sm:$0xff] %v4222_v36   ;;  %v3589_v53 = vadd.f32 %v6682_v43, %v3588_v5  ;;  %v4847_v2 = vpop.f32.mrb[78].mxu0 }
 0x424   : > { %v3600_v3 = vadd.f32 %v4847_v2, %v6682_v43  ;;  %v3591_v12 = vpop.f32.mrb[79].mxu0  ;;  %v3681_v13 = vmax.f32 %v3597_v40, 0.0 }
 0x425   : > { %v3592_v51 = vadd.f32 %v6682_v43, %v3591_v12  ;;  %v3679_v18 = vmax.f32 %v3589_v53, 0.0 }
 0x426   : > { %v3682_v9 = vmax.f32 %v3600_v3, 0.0 }
 0x427   : > { %v3680_v46 = vmax.f32 %v3592_v51, 0.0 }
 0x428   : > { %v4237_v4 = vpack.c.bf16 %v3682_v9, %v3681_v13 }
 0x429   : > { %v4232_v7 = vpack.c.bf16 %v3680_v46, %v3679_v18  ;;  %v4850_v32 = vpop.f32.mrb[80].mxu0 }
 0x42a   : > { %4285 = vst [vmem:[%s6693_s28 + $0x38] sm:$0xff] %v4237_v4   ;;  %v3613_v42 = vadd.f32 %v4850_v32, %v6682_v43  ;;  %v3604_v55 = vpop.f32.mrb[81].mxu0 }
 0x42b   : > { %4284 = vst [vmem:[%s6693_s28 + $0x30] sm:$0xff] %v4232_v7   ;;  %v3605_v58 = vadd.f32 %v6682_v43, %v3604_v55  ;;  %v4851_v22 = vpop.f32.mrb[82].mxu0 }
 0x42c   : > { %v3616_v0 = vadd.f32 %v4851_v22, %v6682_v43  ;;  %v3607_v25 = vpop.f32.mrb[83].mxu0  ;;  %v3685_v20 = vmax.f32 %v3613_v42, 0.0 }
 0x42d   : > { %v3608_v27 = vadd.f32 %v6682_v43, %v3607_v25  ;;  %v3683_v54 = vmax.f32 %v3605_v58, 0.0 }
 0x42e   : > { %v3686_v26 = vmax.f32 %v3616_v0, 0.0 }
 0x42f   : > { %v3684_v16 = vmax.f32 %v3608_v27, 0.0 }
 0x430   : > { %v4247_v33 = vpack.c.bf16 %v3686_v26, %v3685_v20 }
 0x431   : > { %v4242_v17 = vpack.c.bf16 %v3684_v16, %v3683_v54  ;;  %v4854_v41 = vpop.f32.mrb[84].mxu0 }
 0x432   : > { %4287 = vst [vmem:[%s6693_s28 + $0x48] sm:$0xff] %v4247_v33   ;;  %v3629_v30 = vadd.f32 %v4854_v41, %v6682_v43  ;;  %v3620_v8 = vpop.f32.mrb[85].mxu0 }
 0x433   : > { %4286 = vst [vmem:[%s6693_s28 + $0x40] sm:$0xff] %v4242_v17   ;;  %v3621_v31 = vadd.f32 %v6682_v43, %v3620_v8  ;;  %v4855_v10 = vpop.f32.mrb[86].mxu0 }
 0x434   : > { %v3632_v60 = vadd.f32 %v4855_v10, %v6682_v43  ;;  %v3623_v24 = vpop.f32.mrb[87].mxu0  ;;  %v3689_v23 = vmax.f32 %v3629_v30, 0.0 }
 0x435   : > { %v3624_v1 = vadd.f32 %v6682_v43, %v3623_v24  ;;  %v3687_v61 = vmax.f32 %v3621_v31, 0.0 }
 0x436   : > { %v3690_v15 = vmax.f32 %v3632_v60, 0.0 }
 0x437   : > { %v3688_v50 = vmax.f32 %v3624_v1, 0.0 }
 0x438   : > { %v4257_v28 = vpack.c.bf16 %v3690_v15, %v3689_v23 }
 0x439   : > { %v4252_v21 = vpack.c.bf16 %v3688_v50, %v3687_v61  ;;  %v4858_v52 = vpop.f32.mrb[88].mxu0 }
 0x43a   : > { %4289 = vst [vmem:[%s6693_s28 + $0x58] sm:$0xff] %v4257_v28   ;;  %v3645_v37 = vadd.f32 %v4858_v52, %v6682_v43  ;;  %v3636_v57 = vpop.f32.mrb[89].mxu0 }
 0x43b   : > { %4288 = vst [vmem:[%s6693_s28 + $0x50] sm:$0xff] %v4252_v21   ;;  %v3637_v29 = vadd.f32 %v6682_v43, %v3636_v57  ;;  %v4859_v14 = vpop.f32.mrb[90].mxu0 }
 0x43c   : > { %v3648_v63 = vadd.f32 %v4859_v14, %v6682_v43  ;;  %v3639_v34 = vpop.f32.mrb[91].mxu0  ;;  %v3693_v6 = vmax.f32 %v3645_v37, 0.0 }
 0x43d   : > { %v3640_v11 = vadd.f32 %v6682_v43, %v3639_v34  ;;  %v3691_v39 = vmax.f32 %v3637_v29, 0.0 }
 0x43e   : > { %v3694_v47 = vmax.f32 %v3648_v63, 0.0 }
 0x43f   : > { %v3692_v45 = vmax.f32 %v3640_v11, 0.0 }
 0x440   : > { %v4267_v62 = vpack.c.bf16 %v3694_v47, %v3693_v6 }
 0x441   : > { %v4262_v49 = vpack.c.bf16 %v3692_v45, %v3691_v39  ;;  %v4862_v19 = vpop.f32.mrb[92].mxu0 }
 0x442   : > { %4291 = vst [vmem:[%s6693_s28 + $0x68] sm:$0xff] %v4267_v62   ;;  %v3661_v48 = vadd.f32 %v4862_v19, %v6682_v43  ;;  %v3652_v56 = vpop.f32.mrb[93].mxu0 }
 0x443   : > { %4290 = vst [vmem:[%s6693_s28 + $0x60] sm:$0xff] %v4262_v49   ;;  %v3653_v35 = vadd.f32 %v6682_v43, %v3652_v56  ;;  %v4863_v38 = vpop.f32.mrb[94].mxu0 }
 0x444   : > { %v3664_v44 = vadd.f32 %v4863_v38, %v6682_v43  ;;  %v3655_v36 = vpop.f32.mrb[95].mxu0  ;;  %v3697_v40 = vmax.f32 %v3661_v48, 0.0 }
 0x445   : > { %v3656_v59 = vadd.f32 %v6682_v43, %v3655_v36  ;;  %v3695_v53 = vmax.f32 %v3653_v35, 0.0 }
 0x446   : > { %v3698_v5 = vmax.f32 %v3664_v44, 0.0 }
 0x447   : > { %v3696_v2 = vmax.f32 %v3656_v59, 0.0 }
 0x448   : > { %v4277_v3 = vpack.c.bf16 %v3698_v5, %v3697_v40 }
 0x449   : > { %v4272_v12 = vpack.c.bf16 %v3696_v2, %v3695_v53 }
 0x44a   : > { %4293 = vst [vmem:[%s6693_s28 + $0x78] sm:$0xff] %v4277_v3  }
 0x44b   : > { %4292 = vst [vmem:[%s6693_s28 + $0x70] sm:$0xff] %v4272_v12  }
 0x44c PF: > { %s17_s24 = sadd.s32 1, %s5187_s24  }
 0x44d   : > { %p14_p4 = scmp.ge.s32.totalorder %s17_s24, 4  }
 0x44f   :  { %16 = sbr.rel (!%p14_p4) target bundleno = 1 (0x1), region = 87 }

</bundles_post_ra>
